<compile_context>
chip_gen: v6e
topology: v6e:2x2x1
jax: 0.10.0
libtpu: 0.0.40
codegen_flags: <defaults>
</compile_context>

<pallas_src>
import math

import jax
import jax.numpy as jnp
from jax.experimental import pallas as pl
from jax.experimental.pallas import tpu as pltpu

# ------------------------- small ViT configuration -------------------------
HIDDEN = 32          # vit_config.hidden_size
NUM_LAYERS = 2       # vit_config.num_hidden_layers
NUM_HEADS = 4        # vit_config.num_attention_heads
HEAD_DIM = HIDDEN // NUM_HEADS
INTERMEDIATE = 64    # vit_config.intermediate_size
IMAGE = 16           # vit_config.image_size
PATCH = 8            # vit_config.patch_size
CHANNELS = 3         # vit_config.num_channels
NUM_PATCHES = (IMAGE // PATCH) ** 2        # 4
SEQ = NUM_PATCHES + 1                      # 5  (CLS + patches)
SEQ_PAD = 8                                # sublane-aligned per-batch slab
NUM_LABELS = 3
LN_EPS = 1e-12       # vit_config.layer_norm_eps
ATTN_SCALE = 1.0 / math.sqrt(HEAD_DIM)
INV_SQRT2 = 1.0 / math.sqrt(2.0)
PATCH_FEAT = CHANNELS * PATCH * PATCH      # 192

# ----------------- packed parameter buffer layouts (static) -----------------
# vecs buffer: (VEC_ROWS, VEC_COLS) fp32, each row holds one small vector.
VEC_COLS = 128
R_PATCH_B = 0
R_CLS = 1
R_POS = 2                       # rows 2 .. 2+SEQ-1 hold pos[0..SEQ-1]
R_FIN_G = R_POS + SEQ           # 7
R_FIN_B = R_FIN_G + 1           # 8
R_CLS_B = R_FIN_B + 1           # 9
R_LAYER0 = R_CLS_B + 1          # 10
(O_LN1_G, O_LN1_B, O_QKV_B, O_O_B,
 O_LN2_G, O_LN2_B, O_FC1_B, O_FC2_B) = range(8)
ROWS_PER_LAYER = 8
VEC_ROWS = 32                   # 26 used, padded to a sublane multiple

# embed_w buffer: rows 0:192 = patch_w (192,32); rows 192:224 = cls_w (32,<=32)
# attn_w  buffer: (L, 32, 128): cols 0:96 = qkv_w, cols 96:128 = o_w
# mlp_w   buffer: (L, 96, 64):  rows 0:32 = fc1_w (32,64), rows 32:96 = fc2_w (64,32)


# ------------------------------ helper math ---------------------------------
def _layernorm(x, g, b):
    mu = jnp.mean(x, axis=-1, keepdims=True)
    var = jnp.mean(jnp.square(x - mu), axis=-1, keepdims=True)
    return (x - mu) * jax.lax.rsqrt(var + LN_EPS) * g + b


def _gelu_exact(y):
    # exact (erf-based) GELU, matching HF ViT hidden_act="gelu"
    return 0.5 * y * (1.0 + jax.lax.erf(y * INV_SQRT2))


# ------------------------------ fused kernel --------------------------------
def _vit_forward_kernel(patches_ref, embed_w_ref, attn_w_ref, mlp_w_ref,
                        vecs_ref, o_ref):
    B = patches_ref.shape[0] // NUM_PATCHES

    def vec(row, width):
        # one small (1, width) parameter row; static offsets
        return vecs_ref[row:row + 1, 0:width]

    # ---- patch embedding: a single (B*NP, 192) x (192, 32) matmul ----
    patch_w = embed_w_ref[0:PATCH_FEAT, :]                       # (192, 32)
    patch_b = vec(R_PATCH_B, HIDDEN)
    emb = jnp.dot(patches_ref[...], patch_w,
                  preferred_element_type=jnp.float32) + patch_b  # (B*NP, 32)

    # ---- build residual stream h: (B*SEQ_PAD, HIDDEN), rows 5..7 padded ----
    cls_pos0 = vec(R_CLS, HIDDEN) + vec(R_POS, HIDDEN)           # cls + pos[0]
    pos_rest = vecs_ref[R_POS + 1:R_POS + SEQ, 0:HIDDEN]         # (NP, 32)
    pad_rows = jnp.zeros((SEQ_PAD - SEQ, HIDDEN), jnp.float32)
    rows = []
    for b in range(B):
        rows.append(cls_pos0)
        rows.append(emb[b * NUM_PATCHES:(b + 1) * NUM_PATCHES, :] + pos_rest)
        rows.append(pad_rows)
    h = jnp.concatenate(rows, axis=0)                            # (B*8, 32)
    # (dropout layers are identity in eval mode)

    # key mask: padded key positions -> -inf before softmax
    kpos = jax.lax.broadcasted_iota(jnp.int32, (1, 1, SEQ_PAD), 2)
    kmask = jnp.where(kpos < SEQ, 0.0, -1e30).astype(jnp.float32)  # (1,1,8)

    # ---------------------- pre-norm transformer layers ----------------------
    for l in range(NUM_LAYERS):
        base = R_LAYER0 + l * ROWS_PER_LAYER

        # --- self-attention block ---
        ln1 = _layernorm(h, vec(base + O_LN1_G, HIDDEN), vec(base + O_LN1_B, HIDDEN))
        qkv_w = attn_w_ref[l, :, 0:3 * HIDDEN]                   # (32, 96)
        o_w = attn_w_ref[l, :, 3 * HIDDEN:4 * HIDDEN]            # (32, 32)
        qkv = jnp.dot(ln1, qkv_w, preferred_element_type=jnp.float32) \
            + vec(base + O_QKV_B, 3 * HIDDEN)                    # (B*8, 96)

        ctx_heads = []
        for hd in range(NUM_HEADS):
            c = hd * HEAD_DIM
            q = qkv[:, c:c + HEAD_DIM].reshape(B, SEQ_PAD, HEAD_DIM)
            k = qkv[:, HIDDEN + c:HIDDEN + c + HEAD_DIM].reshape(B, SEQ_PAD, HEAD_DIM)
            v = qkv[:, 2 * HIDDEN + c:2 * HIDDEN + c + HEAD_DIM].reshape(B, SEQ_PAD, HEAD_DIM)
            s = jnp.einsum("bqd,bkd->bqk", q, k,
                           preferred_element_type=jnp.float32) * ATTN_SCALE
            s = s + kmask
            m = jnp.max(s, axis=-1, keepdims=True)
            p = jnp.exp(s - m)
            p = p / jnp.sum(p, axis=-1, keepdims=True)           # exact softmax
            ctx_heads.append(
                jnp.einsum("bqk,bkd->bqd", p, v,
                           preferred_element_type=jnp.float32)
                .reshape(B * SEQ_PAD, HEAD_DIM))
        ctx = jnp.concatenate(ctx_heads, axis=-1)                # (B*8, 32)

        attn_out = jnp.dot(ctx, o_w, preferred_element_type=jnp.float32) \
            + vec(base + O_O_B, HIDDEN)
        h = h + attn_out                                         # residual 1

        # --- MLP block ---
        ln2 = _layernorm(h, vec(base + O_LN2_G, HIDDEN), vec(base + O_LN2_B, HIDDEN))
        fc1_w = mlp_w_ref[l, 0:HIDDEN, :]                        # (32, 64)
        fc2_w = mlp_w_ref[l, HIDDEN:HIDDEN + INTERMEDIATE, 0:HIDDEN]  # (64, 32)
        y = jnp.dot(ln2, fc1_w, preferred_element_type=jnp.float32) \
            + vec(base + O_FC1_B, INTERMEDIATE)
        y = _gelu_exact(y)
        y = jnp.dot(y, fc2_w, preferred_element_type=jnp.float32) \
            + vec(base + O_FC2_B, HIDDEN)
        h = h + y                                                # residual 2

    # ---- final LayerNorm on CLS rows only + classifier head -> logits ----
    cls_rows = jnp.concatenate(
        [h[b * SEQ_PAD:b * SEQ_PAD + 1, :] for b in range(B)], axis=0)  # (B, 32)
    cls_rows = _layernorm(cls_rows, vec(R_FIN_G, HIDDEN), vec(R_FIN_B, HIDDEN))
    cls_w = embed_w_ref[PATCH_FEAT:PATCH_FEAT + HIDDEN, 0:NUM_LABELS]   # (32, 3)
    o_ref[...] = jnp.dot(cls_rows, cls_w,
                         preferred_element_type=jnp.float32) + vec(R_CLS_B, NUM_LABELS)


# --------------------------- deterministic params ---------------------------
def init_params(key):
    def normal(k, shape, scale=0.02):
        return (scale * jax.random.normal(k, shape)).astype(jnp.float32)

    keys = iter(jax.random.split(key, 8 + 4 * NUM_LAYERS))
    params = {
        # patch-embedding conv expressed as (C*p*p, hidden) matmul weight
        "patch_w": normal(next(keys), (PATCH_FEAT, HIDDEN)),
        "patch_b": jnp.zeros((HIDDEN,), jnp.float32),
        "cls": normal(next(keys), (HIDDEN,)),
        "pos": normal(next(keys), (SEQ, HIDDEN)),
        "ln1_g": jnp.ones((NUM_LAYERS, HIDDEN), jnp.float32),
        "ln1_b": jnp.zeros((NUM_LAYERS, HIDDEN), jnp.float32),
        "ln2_g": jnp.ones((NUM_LAYERS, HIDDEN), jnp.float32),
        "ln2_b": jnp.zeros((NUM_LAYERS, HIDDEN), jnp.float32),
        "qkv_b": jnp.zeros((NUM_LAYERS, 3 * HIDDEN), jnp.float32),
        "o_b": jnp.zeros((NUM_LAYERS, HIDDEN), jnp.float32),
        "fc1_b": jnp.zeros((NUM_LAYERS, INTERMEDIATE), jnp.float32),
        "fc2_b": jnp.zeros((NUM_LAYERS, HIDDEN), jnp.float32),
        "final_ln_g": jnp.ones((HIDDEN,), jnp.float32),
        "final_ln_b": jnp.zeros((HIDDEN,), jnp.float32),
        "cls_b": jnp.zeros((NUM_LABELS,), jnp.float32),
    }
    params["qkv_w"] = jnp.stack([normal(next(keys), (HIDDEN, 3 * HIDDEN))
                                 for _ in range(NUM_LAYERS)])
    params["o_w"] = jnp.stack([normal(next(keys), (HIDDEN, HIDDEN))
                               for _ in range(NUM_LAYERS)])
    params["fc1_w"] = jnp.stack([normal(next(keys), (HIDDEN, INTERMEDIATE))
                                 for _ in range(NUM_LAYERS)])
    params["fc2_w"] = jnp.stack([normal(next(keys), (INTERMEDIATE, HIDDEN))
                                 for _ in range(NUM_LAYERS)])
    params["cls_w"] = normal(next(keys), (HIDDEN, NUM_LABELS))
    return params


def pack_params(p):
    """Pack the ~21 small parameter tensors into 4 DMA-friendly buffers."""
    vecs = jnp.zeros((VEC_ROWS, VEC_COLS), jnp.float32)
    vecs = vecs.at[R_PATCH_B, :HIDDEN].set(p["patch_b"])
    vecs = vecs.at[R_CLS, :HIDDEN].set(p["cls"])
    vecs = vecs.at[R_POS:R_POS + SEQ, :HIDDEN].set(p["pos"])
    vecs = vecs.at[R_FIN_G, :HIDDEN].set(p["final_ln_g"])
    vecs = vecs.at[R_FIN_B, :HIDDEN].set(p["final_ln_b"])
    vecs = vecs.at[R_CLS_B, :NUM_LABELS].set(p["cls_b"])
    for l in range(NUM_LAYERS):
        base = R_LAYER0 + l * ROWS_PER_LAYER
        vecs = vecs.at[base + O_LN1_G, :HIDDEN].set(p["ln1_g"][l])
        vecs = vecs.at[base + O_LN1_B, :HIDDEN].set(p["ln1_b"][l])
        vecs = vecs.at[base + O_QKV_B, :3 * HIDDEN].set(p["qkv_b"][l])
        vecs = vecs.at[base + O_O_B, :HIDDEN].set(p["o_b"][l])
        vecs = vecs.at[base + O_LN2_G, :HIDDEN].set(p["ln2_g"][l])
        vecs = vecs.at[base + O_LN2_B, :HIDDEN].set(p["ln2_b"][l])
        vecs = vecs.at[base + O_FC1_B, :INTERMEDIATE].set(p["fc1_b"][l])
        vecs = vecs.at[base + O_FC2_B, :HIDDEN].set(p["fc2_b"][l])

    embed_w = jnp.zeros((PATCH_FEAT + HIDDEN, HIDDEN), jnp.float32)
    embed_w = embed_w.at[:PATCH_FEAT, :].set(p["patch_w"])
    embed_w = embed_w.at[PATCH_FEAT:, :NUM_LABELS].set(p["cls_w"])

    attn_w = jnp.concatenate([p["qkv_w"], p["o_w"]], axis=-1)    # (L, 32, 128)

    mlp_w = jnp.zeros((NUM_LAYERS, HIDDEN + INTERMEDIATE, INTERMEDIATE), jnp.float32)
    mlp_w = mlp_w.at[:, :HIDDEN, :].set(p["fc1_w"])
    mlp_w = mlp_w.at[:, HIDDEN:, :HIDDEN].set(p["fc2_w"])

    return {"embed_w": embed_w, "attn_w": attn_w, "mlp_w": mlp_w, "vecs": vecs}


# --------------------------------- forward ----------------------------------
def fine_tuned_vit_forward(packed, pixel_values):
    """pixel_values: (B, C, H, W) float32 (NCHW, as PyTorch). Returns (B, NUM_LABELS)."""
    B = pixel_values.shape[0]
    p = PATCH

    # Patch extraction: stride-p / kernel-p conv == per-patch matmul.
    # (wrapper-side layout plumbing only; the matmul itself runs in the kernel)
    x = pixel_values.reshape(B, CHANNELS, IMAGE // p, p, IMAGE // p, p)
    x = x.transpose(0, 2, 4, 1, 3, 5)                    # (B, Hp, Wp, C, p, p)
    patches = x.reshape(B * NUM_PATCHES, CHANNELS * p * p)

    args = (patches, packed["embed_w"], packed["attn_w"],
            packed["mlp_w"], packed["vecs"])

    # Whole forward in a single pallas_call; all intermediates stay in vregs,
    # only the (B, NUM_LABELS) logits go back to HBM.
    # TODO(synk): add a batch grid axis marked "parallel" (v7x 2-TC split)
    #             once per-TC work exceeds per-step overhead (roughly B >= 16).
    return pl.pallas_call(
        _vit_forward_kernel,
        out_shape=jax.ShapeDtypeStruct((B, NUM_LABELS), jnp.float32),
        in_specs=[pl.BlockSpec(memory_space=pltpu.MemorySpace.VMEM)] * len(args),
        out_specs=pl.BlockSpec(memory_space=pltpu.MemorySpace.VMEM),
    )(*args)


# ----------------------------------- main ------------------------------------
if __name__ == "__main__":
    key = jax.random.PRNGKey(0)
    k_params, k_input = jax.random.split(key)
    params = init_params(k_params)
    packed = pack_params(params)
    pixel_values = jax.random.normal(
        k_input, (2, CHANNELS, IMAGE, IMAGE), dtype=jnp.float32
    )

    logits = jax.jit(fine_tuned_vit_forward)(packed, pixel_values)
    jax.block_until_ready(logits)
    assert logits.shape == (2, NUM_LABELS)
    assert bool(jnp.all(jnp.isfinite(logits)))
    print("KERNEL_OK")
</pallas_src>

<mosaic_0001>
module attributes {stable_mosaic.version = 11 : i64} {
  func.func @_vit_forward_kernel(%arg0: memref<8x192xf32, #tpu.memory_space<vmem>>, %arg1: memref<224x32xf32, #tpu.memory_space<vmem>>, %arg2: memref<2x32x128xf32, #tpu.memory_space<vmem>>, %arg3: memref<2x96x64xf32, #tpu.memory_space<vmem>>, %arg4: memref<32x128xf32, #tpu.memory_space<vmem>>, %arg5: memref<2x3xf32, #tpu.memory_space<vmem>>) attributes {dimension_semantics = [], scalar_prefetch = 0 : i64, scratch_operands = 0 : i64, tpu.core_type = #tpu.core_type<tc>} {
    %c0 = arith.constant 0 : index
    %c0_0 = arith.constant 0 : index
    %0 = vector.load %arg1[%c0, %c0_0] : memref<224x32xf32, #tpu.memory_space<vmem>>, vector<192x32xf32>
    %c0_1 = arith.constant 0 : index
    %c0_2 = arith.constant 0 : index
    %1 = vector.load %arg4[%c0_1, %c0_2] : memref<32x128xf32, #tpu.memory_space<vmem>>, vector<1x32xf32>
    %c0_3 = arith.constant 0 : index
    %c0_4 = arith.constant 0 : index
    %2 = vector.load %arg0[%c0_3, %c0_4] : memref<8x192xf32, #tpu.memory_space<vmem>>, vector<8x192xf32>
    %cst = arith.constant dense<0.000000e+00> : vector<8x32xf32>
    %3 = tpu.matmul %2, %0, %cst {dimension_numbers = #tpu.dot_dimension_numbers<[1], [0], [0], [1], [0, 0, 1, 1], [], []>} : vector<8x192xf32>, vector<192x32xf32>, vector<8x32xf32> -> vector<8x32xf32>
    %4 = vector.broadcast %1 : vector<1x32xf32> to vector<8x32xf32>
    %5 = arith.addf %3, %4 : vector<8x32xf32>
    %c1 = arith.constant 1 : index
    %c0_5 = arith.constant 0 : index
    %6 = vector.load %arg4[%c1, %c0_5] : memref<32x128xf32, #tpu.memory_space<vmem>>, vector<1x32xf32>
    %c2 = arith.constant 2 : index
    %c0_6 = arith.constant 0 : index
    %7 = vector.load %arg4[%c2, %c0_6] : memref<32x128xf32, #tpu.memory_space<vmem>>, vector<1x32xf32>
    %8 = arith.addf %6, %7 : vector<1x32xf32>
    %c3 = arith.constant 3 : index
    %c0_7 = arith.constant 0 : index
    %9 = vector.load %arg4[%c3, %c0_7] : memref<32x128xf32, #tpu.memory_space<vmem>>, vector<4x32xf32>
    %cst_8 = arith.constant 0.000000e+00 : f32
    %10 = vector.broadcast %cst_8 : f32 to vector<3x32xf32>
    %11 = vector.extract_strided_slice %5 {offsets = [0, 0], sizes = [4, 32], strides = [1, 1]} : vector<8x32xf32> to vector<4x32xf32>
    %12 = arith.addf %11, %9 : vector<4x32xf32>
    %13 = vector.extract_strided_slice %5 {offsets = [4, 0], sizes = [4, 32], strides = [1, 1]} : vector<8x32xf32> to vector<4x32xf32>
    %14 = arith.addf %13, %9 : vector<4x32xf32>
    %15 = tpu.concatenate %8, %12, %10, %8, %14, %10 in 0 : vector<1x32xf32>, vector<4x32xf32>, vector<3x32xf32>, vector<1x32xf32>, vector<4x32xf32>, vector<3x32xf32> -> vector<16x32xf32>
    %16 = tpu.iota {dimensions = array<i32: 2>} : vector<1x1x8xi32>
    %c5_i32 = arith.constant 5 : i32
    %17 = vector.broadcast %c5_i32 : i32 to vector<1x1x8xi32>
    %18 = arith.cmpi slt, %16, %17 : vector<1x1x8xi32>
    %cst_9 = arith.constant 0.000000e+00 : f32
    %cst_10 = arith.constant -1.000000e+30 : f32
    %19 = vector.broadcast %cst_9 : f32 to vector<1x1x8xf32>
    %20 = vector.broadcast %cst_10 : f32 to vector<1x1x8xf32>
    %21 = arith.select %18, %19, %20 : vector<1x1x8xi1>, vector<1x1x8xf32>
    %c10 = arith.constant 10 : index
    %c0_11 = arith.constant 0 : index
    %22 = vector.load %arg4[%c10, %c0_11] : memref<32x128xf32, #tpu.memory_space<vmem>>, vector<1x32xf32>
    %c11 = arith.constant 11 : index
    %c0_12 = arith.constant 0 : index
    %23 = vector.load %arg4[%c11, %c0_12] : memref<32x128xf32, #tpu.memory_space<vmem>>, vector<1x32xf32>
    %cst_13 = arith.constant dense<0.000000e+00> : vector<16xf32>
    %24 = vector.multi_reduction <add>, %15, %cst_13 [1] : vector<16x32xf32> to vector<16xf32>
    %25 = vector.shape_cast %24 : vector<16xf32> to vector<16x1xf32>
    %cst_14 = arith.constant 3.200000e+01 : f32
    %26 = vector.broadcast %cst_14 : f32 to vector<16x1xf32>
    %27 = arith.divf %25, %26 : vector<16x1xf32>
    %28 = vector.broadcast %27 : vector<16x1xf32> to vector<16x32xf32>
    %29 = arith.subf %15, %28 : vector<16x32xf32>
    %30 = arith.mulf %29, %29 : vector<16x32xf32>
    %cst_15 = arith.constant dense<0.000000e+00> : vector<16xf32>
    %31 = vector.multi_reduction <add>, %30, %cst_15 [1] : vector<16x32xf32> to vector<16xf32>
    %32 = vector.shape_cast %31 : vector<16xf32> to vector<16x1xf32>
    %cst_16 = arith.constant 3.200000e+01 : f32
    %33 = vector.broadcast %cst_16 : f32 to vector<16x1xf32>
    %34 = arith.divf %32, %33 : vector<16x1xf32>
    %35 = vector.broadcast %27 : vector<16x1xf32> to vector<16x32xf32>
    %36 = arith.subf %15, %35 : vector<16x32xf32>
    %cst_17 = arith.constant 9.99999996E-13 : f32
    %37 = vector.broadcast %cst_17 : f32 to vector<16x1xf32>
    %38 = arith.addf %34, %37 : vector<16x1xf32>
    %39 = math.rsqrt %38 : vector<16x1xf32>
    %40 = vector.broadcast %39 : vector<16x1xf32> to vector<16x32xf32>
    %41 = arith.mulf %36, %40 : vector<16x32xf32>
    %42 = vector.broadcast %22 : vector<1x32xf32> to vector<16x32xf32>
    %43 = arith.mulf %41, %42 : vector<16x32xf32>
    %44 = vector.broadcast %23 : vector<1x32xf32> to vector<16x32xf32>
    %45 = arith.addf %43, %44 : vector<16x32xf32>
    %c0_18 = arith.constant 0 : index
    %c0_19 = arith.constant 0 : index
    %c0_20 = arith.constant 0 : index
    %46 = vector.load %arg2[%c0_18, %c0_19, %c0_20] : memref<2x32x128xf32, #tpu.memory_space<vmem>>, vector<1x32x96xf32>
    %47 = vector.shape_cast %46 : vector<1x32x96xf32> to vector<32x96xf32>
    %c0_21 = arith.constant 0 : index
    %c0_22 = arith.constant 0 : index
    %c96 = arith.constant 96 : index
    %48 = vector.load %arg2[%c0_21, %c0_22, %c96] : memref<2x32x128xf32, #tpu.memory_space<vmem>>, vector<1x32x32xf32>
    %49 = vector.shape_cast %48 : vector<1x32x32xf32> to vector<32x32xf32>
    %cst_23 = arith.constant dense<0.000000e+00> : vector<16x96xf32>
    %50 = tpu.matmul %45, %47, %cst_23 {dimension_numbers = #tpu.dot_dimension_numbers<[1], [0], [0], [1], [0, 0, 1, 1], [], []>} : vector<16x32xf32>, vector<32x96xf32>, vector<16x96xf32> -> vector<16x96xf32>
    %c12 = arith.constant 12 : index
    %c0_24 = arith.constant 0 : index
    %51 = vector.load %arg4[%c12, %c0_24] : memref<32x128xf32, #tpu.memory_space<vmem>>, vector<1x96xf32>
    %52 = vector.broadcast %51 : vector<1x96xf32> to vector<16x96xf32>
    %53 = arith.addf %50, %52 : vector<16x96xf32>
    %54 = vector.extract_strided_slice %53 {offsets = [0, 0], sizes = [16, 8], strides = [1, 1]} : vector<16x96xf32> to vector<16x8xf32>
    %55 = vector.shape_cast %54 : vector<16x8xf32> to vector<2x8x8xf32>
    %56 = vector.extract_strided_slice %53 {offsets = [0, 32], sizes = [16, 8], strides = [1, 1]} : vector<16x96xf32> to vector<16x8xf32>
    %57 = vector.shape_cast %56 : vector<16x8xf32> to vector<2x8x8xf32>
    %58 = vector.extract_strided_slice %53 {offsets = [0, 64], sizes = [16, 8], strides = [1, 1]} : vector<16x96xf32> to vector<16x8xf32>
    %59 = vector.shape_cast %58 : vector<16x8xf32> to vector<2x8x8xf32>
    "tpu.trace_start"() <{level = 10 : i32, message = "bqd,bkd->bqk"}> : () -> ()
    %cst_25 = arith.constant dense<0.000000e+00> : vector<2x8x8xf32>
    %60 = tpu.matmul %55, %57, %cst_25 {dimension_numbers = #tpu.dot_dimension_numbers<[2], [2], [1], [1], [0, 0, 0, 1, 1, 1], [0], [0]>} : vector<2x8x8xf32>, vector<2x8x8xf32>, vector<2x8x8xf32> -> vector<2x8x8xf32>
    "tpu.trace_stop"() : () -> ()
    %cst_26 = arith.constant 0.353553385 : f32
    %61 = vector.broadcast %cst_26 : f32 to vector<2x8x8xf32>
    %62 = arith.mulf %60, %61 : vector<2x8x8xf32>
    %63 = vector.broadcast %21 : vector<1x1x8xf32> to vector<2x8x8xf32>
    %64 = arith.addf %62, %63 : vector<2x8x8xf32>
    %cst_27 = arith.constant dense<0xFF800000> : vector<2x8xf32>
    %65 = vector.multi_reduction <maximumf>, %64, %cst_27 [2] : vector<2x8x8xf32> to vector<2x8xf32>
    %66 = vector.shape_cast %65 : vector<2x8xf32> to vector<2x8x1xf32>
    %67 = vector.broadcast %66 : vector<2x8x1xf32> to vector<2x8x8xf32>
    %68 = arith.subf %64, %67 : vector<2x8x8xf32>
    %69 = math.exp %68 : vector<2x8x8xf32>
    %cst_28 = arith.constant dense<0.000000e+00> : vector<2x8xf32>
    %70 = vector.multi_reduction <add>, %69, %cst_28 [2] : vector<2x8x8xf32> to vector<2x8xf32>
    %71 = vector.shape_cast %70 : vector<2x8xf32> to vector<2x8x1xf32>
    %72 = vector.broadcast %71 : vector<2x8x1xf32> to vector<2x8x8xf32>
    %73 = arith.divf %69, %72 : vector<2x8x8xf32>
    "tpu.trace_start"() <{level = 10 : i32, message = "bqk,bkd->bqd"}> : () -> ()
    %cst_29 = arith.constant dense<0.000000e+00> : vector<2x8x8xf32>
    %74 = tpu.matmul %73, %59, %cst_29 {dimension_numbers = #tpu.dot_dimension_numbers<[2], [1], [1], [2], [0, 0, 0, 1, 1, 2], [0], [0]>} : vector<2x8x8xf32>, vector<2x8x8xf32>, vector<2x8x8xf32> -> vector<2x8x8xf32>
    "tpu.trace_stop"() : () -> ()
    %75 = vector.shape_cast %74 : vector<2x8x8xf32> to vector<16x8xf32>
    %76 = vector.extract_strided_slice %53 {offsets = [0, 8], sizes = [16, 8], strides = [1, 1]} : vector<16x96xf32> to vector<16x8xf32>
    %77 = vector.shape_cast %76 : vector<16x8xf32> to vector<2x8x8xf32>
    %78 = vector.extract_strided_slice %53 {offsets = [0, 40], sizes = [16, 8], strides = [1, 1]} : vector<16x96xf32> to vector<16x8xf32>
    %79 = vector.shape_cast %78 : vector<16x8xf32> to vector<2x8x8xf32>
    %80 = vector.extract_strided_slice %53 {offsets = [0, 72], sizes = [16, 8], strides = [1, 1]} : vector<16x96xf32> to vector<16x8xf32>
    %81 = vector.shape_cast %80 : vector<16x8xf32> to vector<2x8x8xf32>
    "tpu.trace_start"() <{level = 10 : i32, message = "bqd,bkd->bqk"}> : () -> ()
    %cst_30 = arith.constant dense<0.000000e+00> : vector<2x8x8xf32>
    %82 = tpu.matmul %77, %79, %cst_30 {dimension_numbers = #tpu.dot_dimension_numbers<[2], [2], [1], [1], [0, 0, 0, 1, 1, 1], [0], [0]>} : vector<2x8x8xf32>, vector<2x8x8xf32>, vector<2x8x8xf32> -> vector<2x8x8xf32>
    "tpu.trace_stop"() : () -> ()
    %cst_31 = arith.constant 0.353553385 : f32
    %83 = vector.broadcast %cst_31 : f32 to vector<2x8x8xf32>
    %84 = arith.mulf %82, %83 : vector<2x8x8xf32>
    %85 = vector.broadcast %21 : vector<1x1x8xf32> to vector<2x8x8xf32>
    %86 = arith.addf %84, %85 : vector<2x8x8xf32>
    %cst_32 = arith.constant dense<0xFF800000> : vector<2x8xf32>
    %87 = vector.multi_reduction <maximumf>, %86, %cst_32 [2] : vector<2x8x8xf32> to vector<2x8xf32>
    %88 = vector.shape_cast %87 : vector<2x8xf32> to vector<2x8x1xf32>
    %89 = vector.broadcast %88 : vector<2x8x1xf32> to vector<2x8x8xf32>
    %90 = arith.subf %86, %89 : vector<2x8x8xf32>
    %91 = math.exp %90 : vector<2x8x8xf32>
    %cst_33 = arith.constant dense<0.000000e+00> : vector<2x8xf32>
    %92 = vector.multi_reduction <add>, %91, %cst_33 [2] : vector<2x8x8xf32> to vector<2x8xf32>
    %93 = vector.shape_cast %92 : vector<2x8xf32> to vector<2x8x1xf32>
    %94 = vector.broadcast %93 : vector<2x8x1xf32> to vector<2x8x8xf32>
    %95 = arith.divf %91, %94 : vector<2x8x8xf32>
    "tpu.trace_start"() <{level = 10 : i32, message = "bqk,bkd->bqd"}> : () -> ()
    %cst_34 = arith.constant dense<0.000000e+00> : vector<2x8x8xf32>
    %96 = tpu.matmul %95, %81, %cst_34 {dimension_numbers = #tpu.dot_dimension_numbers<[2], [1], [1], [2], [0, 0, 0, 1, 1, 2], [0], [0]>} : vector<2x8x8xf32>, vector<2x8x8xf32>, vector<2x8x8xf32> -> vector<2x8x8xf32>
    "tpu.trace_stop"() : () -> ()
    %97 = vector.shape_cast %96 : vector<2x8x8xf32> to vector<16x8xf32>
    %98 = vector.extract_strided_slice %53 {offsets = [0, 16], sizes = [16, 8], strides = [1, 1]} : vector<16x96xf32> to vector<16x8xf32>
    %99 = vector.shape_cast %98 : vector<16x8xf32> to vector<2x8x8xf32>
    %100 = vector.extract_strided_slice %53 {offsets = [0, 48], sizes = [16, 8], strides = [1, 1]} : vector<16x96xf32> to vector<16x8xf32>
    %101 = vector.shape_cast %100 : vector<16x8xf32> to vector<2x8x8xf32>
    %102 = vector.extract_strided_slice %53 {offsets = [0, 80], sizes = [16, 8], strides = [1, 1]} : vector<16x96xf32> to vector<16x8xf32>
    %103 = vector.shape_cast %102 : vector<16x8xf32> to vector<2x8x8xf32>
    "tpu.trace_start"() <{level = 10 : i32, message = "bqd,bkd->bqk"}> : () -> ()
    %cst_35 = arith.constant dense<0.000000e+00> : vector<2x8x8xf32>
    %104 = tpu.matmul %99, %101, %cst_35 {dimension_numbers = #tpu.dot_dimension_numbers<[2], [2], [1], [1], [0, 0, 0, 1, 1, 1], [0], [0]>} : vector<2x8x8xf32>, vector<2x8x8xf32>, vector<2x8x8xf32> -> vector<2x8x8xf32>
    "tpu.trace_stop"() : () -> ()
    %cst_36 = arith.constant 0.353553385 : f32
    %105 = vector.broadcast %cst_36 : f32 to vector<2x8x8xf32>
    %106 = arith.mulf %104, %105 : vector<2x8x8xf32>
    %107 = vector.broadcast %21 : vector<1x1x8xf32> to vector<2x8x8xf32>
    %108 = arith.addf %106, %107 : vector<2x8x8xf32>
    %cst_37 = arith.constant dense<0xFF800000> : vector<2x8xf32>
    %109 = vector.multi_reduction <maximumf>, %108, %cst_37 [2] : vector<2x8x8xf32> to vector<2x8xf32>
    %110 = vector.shape_cast %109 : vector<2x8xf32> to vector<2x8x1xf32>
    %111 = vector.broadcast %110 : vector<2x8x1xf32> to vector<2x8x8xf32>
    %112 = arith.subf %108, %111 : vector<2x8x8xf32>
    %113 = math.exp %112 : vector<2x8x8xf32>
    %cst_38 = arith.constant dense<0.000000e+00> : vector<2x8xf32>
    %114 = vector.multi_reduction <add>, %113, %cst_38 [2] : vector<2x8x8xf32> to vector<2x8xf32>
    %115 = vector.shape_cast %114 : vector<2x8xf32> to vector<2x8x1xf32>
    %116 = vector.broadcast %115 : vector<2x8x1xf32> to vector<2x8x8xf32>
    %117 = arith.divf %113, %116 : vector<2x8x8xf32>
    "tpu.trace_start"() <{level = 10 : i32, message = "bqk,bkd->bqd"}> : () -> ()
    %cst_39 = arith.constant dense<0.000000e+00> : vector<2x8x8xf32>
    %118 = tpu.matmul %117, %103, %cst_39 {dimension_numbers = #tpu.dot_dimension_numbers<[2], [1], [1], [2], [0, 0, 0, 1, 1, 2], [0], [0]>} : vector<2x8x8xf32>, vector<2x8x8xf32>, vector<2x8x8xf32> -> vector<2x8x8xf32>
    "tpu.trace_stop"() : () -> ()
    %119 = vector.shape_cast %118 : vector<2x8x8xf32> to vector<16x8xf32>
    %120 = vector.extract_strided_slice %53 {offsets = [0, 24], sizes = [16, 8], strides = [1, 1]} : vector<16x96xf32> to vector<16x8xf32>
    %121 = vector.shape_cast %120 : vector<16x8xf32> to vector<2x8x8xf32>
    %122 = vector.extract_strided_slice %53 {offsets = [0, 56], sizes = [16, 8], strides = [1, 1]} : vector<16x96xf32> to vector<16x8xf32>
    %123 = vector.shape_cast %122 : vector<16x8xf32> to vector<2x8x8xf32>
    %124 = vector.extract_strided_slice %53 {offsets = [0, 88], sizes = [16, 8], strides = [1, 1]} : vector<16x96xf32> to vector<16x8xf32>
    %125 = vector.shape_cast %124 : vector<16x8xf32> to vector<2x8x8xf32>
    "tpu.trace_start"() <{level = 10 : i32, message = "bqd,bkd->bqk"}> : () -> ()
    %cst_40 = arith.constant dense<0.000000e+00> : vector<2x8x8xf32>
    %126 = tpu.matmul %121, %123, %cst_40 {dimension_numbers = #tpu.dot_dimension_numbers<[2], [2], [1], [1], [0, 0, 0, 1, 1, 1], [0], [0]>} : vector<2x8x8xf32>, vector<2x8x8xf32>, vector<2x8x8xf32> -> vector<2x8x8xf32>
    "tpu.trace_stop"() : () -> ()
    %cst_41 = arith.constant 0.353553385 : f32
    %127 = vector.broadcast %cst_41 : f32 to vector<2x8x8xf32>
    %128 = arith.mulf %126, %127 : vector<2x8x8xf32>
    %129 = vector.broadcast %21 : vector<1x1x8xf32> to vector<2x8x8xf32>
    %130 = arith.addf %128, %129 : vector<2x8x8xf32>
    %cst_42 = arith.constant dense<0xFF800000> : vector<2x8xf32>
    %131 = vector.multi_reduction <maximumf>, %130, %cst_42 [2] : vector<2x8x8xf32> to vector<2x8xf32>
    %132 = vector.shape_cast %131 : vector<2x8xf32> to vector<2x8x1xf32>
    %133 = vector.broadcast %132 : vector<2x8x1xf32> to vector<2x8x8xf32>
    %134 = arith.subf %130, %133 : vector<2x8x8xf32>
    %135 = math.exp %134 : vector<2x8x8xf32>
    %cst_43 = arith.constant dense<0.000000e+00> : vector<2x8xf32>
    %136 = vector.multi_reduction <add>, %135, %cst_43 [2] : vector<2x8x8xf32> to vector<2x8xf32>
    %137 = vector.shape_cast %136 : vector<2x8xf32> to vector<2x8x1xf32>
    %138 = vector.broadcast %137 : vector<2x8x1xf32> to vector<2x8x8xf32>
    %139 = arith.divf %135, %138 : vector<2x8x8xf32>
    "tpu.trace_start"() <{level = 10 : i32, message = "bqk,bkd->bqd"}> : () -> ()
    %cst_44 = arith.constant dense<0.000000e+00> : vector<2x8x8xf32>
    %140 = tpu.matmul %139, %125, %cst_44 {dimension_numbers = #tpu.dot_dimension_numbers<[2], [1], [1], [2], [0, 0, 0, 1, 1, 2], [0], [0]>} : vector<2x8x8xf32>, vector<2x8x8xf32>, vector<2x8x8xf32> -> vector<2x8x8xf32>
    "tpu.trace_stop"() : () -> ()
    %141 = vector.shape_cast %140 : vector<2x8x8xf32> to vector<16x8xf32>
    %142 = tpu.concatenate %75, %97, %119, %141 in 1 : vector<16x8xf32>, vector<16x8xf32>, vector<16x8xf32>, vector<16x8xf32> -> vector<16x32xf32>
    %cst_45 = arith.constant dense<0.000000e+00> : vector<16x32xf32>
    %143 = tpu.matmul %142, %49, %cst_45 {dimension_numbers = #tpu.dot_dimension_numbers<[1], [0], [0], [1], [0, 0, 1, 1], [], []>} : vector<16x32xf32>, vector<32x32xf32>, vector<16x32xf32> -> vector<16x32xf32>
    %c13 = arith.constant 13 : index
    %c0_46 = arith.constant 0 : index
    %144 = vector.load %arg4[%c13, %c0_46] : memref<32x128xf32, #tpu.memory_space<vmem>>, vector<1x32xf32>
    %145 = vector.broadcast %144 : vector<1x32xf32> to vector<16x32xf32>
    %146 = arith.addf %143, %145 : vector<16x32xf32>
    %147 = arith.addf %15, %146 : vector<16x32xf32>
    %c14 = arith.constant 14 : index
    %c0_47 = arith.constant 0 : index
    %148 = vector.load %arg4[%c14, %c0_47] : memref<32x128xf32, #tpu.memory_space<vmem>>, vector<1x32xf32>
    %c15 = arith.constant 15 : index
    %c0_48 = arith.constant 0 : index
    %149 = vector.load %arg4[%c15, %c0_48] : memref<32x128xf32, #tpu.memory_space<vmem>>, vector<1x32xf32>
    %cst_49 = arith.constant dense<0.000000e+00> : vector<16xf32>
    %150 = vector.multi_reduction <add>, %147, %cst_49 [1] : vector<16x32xf32> to vector<16xf32>
    %151 = vector.shape_cast %150 : vector<16xf32> to vector<16x1xf32>
    %cst_50 = arith.constant 3.200000e+01 : f32
    %152 = vector.broadcast %cst_50 : f32 to vector<16x1xf32>
    %153 = arith.divf %151, %152 : vector<16x1xf32>
    %154 = vector.broadcast %153 : vector<16x1xf32> to vector<16x32xf32>
    %155 = arith.subf %147, %154 : vector<16x32xf32>
    %156 = arith.mulf %155, %155 : vector<16x32xf32>
    %cst_51 = arith.constant dense<0.000000e+00> : vector<16xf32>
    %157 = vector.multi_reduction <add>, %156, %cst_51 [1] : vector<16x32xf32> to vector<16xf32>
    %158 = vector.shape_cast %157 : vector<16xf32> to vector<16x1xf32>
    %cst_52 = arith.constant 3.200000e+01 : f32
    %159 = vector.broadcast %cst_52 : f32 to vector<16x1xf32>
    %160 = arith.divf %158, %159 : vector<16x1xf32>
    %161 = vector.broadcast %153 : vector<16x1xf32> to vector<16x32xf32>
    %162 = arith.subf %147, %161 : vector<16x32xf32>
    %cst_53 = arith.constant 9.99999996E-13 : f32
    %163 = vector.broadcast %cst_53 : f32 to vector<16x1xf32>
    %164 = arith.addf %160, %163 : vector<16x1xf32>
    %165 = math.rsqrt %164 : vector<16x1xf32>
    %166 = vector.broadcast %165 : vector<16x1xf32> to vector<16x32xf32>
    %167 = arith.mulf %162, %166 : vector<16x32xf32>
    %168 = vector.broadcast %148 : vector<1x32xf32> to vector<16x32xf32>
    %169 = arith.mulf %167, %168 : vector<16x32xf32>
    %170 = vector.broadcast %149 : vector<1x32xf32> to vector<16x32xf32>
    %171 = arith.addf %169, %170 : vector<16x32xf32>
    %c0_54 = arith.constant 0 : index
    %c0_55 = arith.constant 0 : index
    %c0_56 = arith.constant 0 : index
    %172 = vector.load %arg3[%c0_54, %c0_55, %c0_56] : memref<2x96x64xf32, #tpu.memory_space<vmem>>, vector<1x32x64xf32>
    %173 = vector.shape_cast %172 : vector<1x32x64xf32> to vector<32x64xf32>
    %c0_57 = arith.constant 0 : index
    %c32 = arith.constant 32 : index
    %c0_58 = arith.constant 0 : index
    %174 = vector.load %arg3[%c0_57, %c32, %c0_58] : memref<2x96x64xf32, #tpu.memory_space<vmem>>, vector<1x64x32xf32>
    %175 = vector.shape_cast %174 : vector<1x64x32xf32> to vector<64x32xf32>
    %cst_59 = arith.constant dense<0.000000e+00> : vector<16x64xf32>
    %176 = tpu.matmul %171, %173, %cst_59 {dimension_numbers = #tpu.dot_dimension_numbers<[1], [0], [0], [1], [0, 0, 1, 1], [], []>} : vector<16x32xf32>, vector<32x64xf32>, vector<16x64xf32> -> vector<16x64xf32>
    %c16 = arith.constant 16 : index
    %c0_60 = arith.constant 0 : index
    %177 = vector.load %arg4[%c16, %c0_60] : memref<32x128xf32, #tpu.memory_space<vmem>>, vector<1x64xf32>
    %178 = vector.broadcast %177 : vector<1x64xf32> to vector<16x64xf32>
    %179 = arith.addf %176, %178 : vector<16x64xf32>
    %cst_61 = arith.constant 5.000000e-01 : f32
    %180 = vector.broadcast %cst_61 : f32 to vector<16x64xf32>
    %181 = arith.mulf %180, %179 : vector<16x64xf32>
    %cst_62 = arith.constant 0.707106769 : f32
    %182 = vector.broadcast %cst_62 : f32 to vector<16x64xf32>
    %183 = arith.mulf %179, %182 : vector<16x64xf32>
    %184 = math.erf %183 : vector<16x64xf32>
    %cst_63 = arith.constant 1.000000e+00 : f32
    %185 = vector.broadcast %cst_63 : f32 to vector<16x64xf32>
    %186 = arith.addf %185, %184 : vector<16x64xf32>
    %187 = arith.mulf %181, %186 : vector<16x64xf32>
    %cst_64 = arith.constant dense<0.000000e+00> : vector<16x32xf32>
    %188 = tpu.matmul %187, %175, %cst_64 {dimension_numbers = #tpu.dot_dimension_numbers<[1], [0], [0], [1], [0, 0, 1, 1], [], []>} : vector<16x64xf32>, vector<64x32xf32>, vector<16x32xf32> -> vector<16x32xf32>
    %c17 = arith.constant 17 : index
    %c0_65 = arith.constant 0 : index
    %189 = vector.load %arg4[%c17, %c0_65] : memref<32x128xf32, #tpu.memory_space<vmem>>, vector<1x32xf32>
    %190 = vector.broadcast %189 : vector<1x32xf32> to vector<16x32xf32>
    %191 = arith.addf %188, %190 : vector<16x32xf32>
    %192 = arith.addf %147, %191 : vector<16x32xf32>
    %c18 = arith.constant 18 : index
    %c0_66 = arith.constant 0 : index
    %193 = vector.load %arg4[%c18, %c0_66] : memref<32x128xf32, #tpu.memory_space<vmem>>, vector<1x32xf32>
    %c19 = arith.constant 19 : index
    %c0_67 = arith.constant 0 : index
    %194 = vector.load %arg4[%c19, %c0_67] : memref<32x128xf32, #tpu.memory_space<vmem>>, vector<1x32xf32>
    %cst_68 = arith.constant dense<0.000000e+00> : vector<16xf32>
    %195 = vector.multi_reduction <add>, %192, %cst_68 [1] : vector<16x32xf32> to vector<16xf32>
    %196 = vector.shape_cast %195 : vector<16xf32> to vector<16x1xf32>
    %cst_69 = arith.constant 3.200000e+01 : f32
    %197 = vector.broadcast %cst_69 : f32 to vector<16x1xf32>
    %198 = arith.divf %196, %197 : vector<16x1xf32>
    %199 = vector.broadcast %198 : vector<16x1xf32> to vector<16x32xf32>
    %200 = arith.subf %192, %199 : vector<16x32xf32>
    %201 = arith.mulf %200, %200 : vector<16x32xf32>
    %cst_70 = arith.constant dense<0.000000e+00> : vector<16xf32>
    %202 = vector.multi_reduction <add>, %201, %cst_70 [1] : vector<16x32xf32> to vector<16xf32>
    %203 = vector.shape_cast %202 : vector<16xf32> to vector<16x1xf32>
    %cst_71 = arith.constant 3.200000e+01 : f32
    %204 = vector.broadcast %cst_71 : f32 to vector<16x1xf32>
    %205 = arith.divf %203, %204 : vector<16x1xf32>
    %206 = vector.broadcast %198 : vector<16x1xf32> to vector<16x32xf32>
    %207 = arith.subf %192, %206 : vector<16x32xf32>
    %cst_72 = arith.constant 9.99999996E-13 : f32
    %208 = vector.broadcast %cst_72 : f32 to vector<16x1xf32>
    %209 = arith.addf %205, %208 : vector<16x1xf32>
    %210 = math.rsqrt %209 : vector<16x1xf32>
    %211 = vector.broadcast %210 : vector<16x1xf32> to vector<16x32xf32>
    %212 = arith.mulf %207, %211 : vector<16x32xf32>
    %213 = vector.broadcast %193 : vector<1x32xf32> to vector<16x32xf32>
    %214 = arith.mulf %212, %213 : vector<16x32xf32>
    %215 = vector.broadcast %194 : vector<1x32xf32> to vector<16x32xf32>
    %216 = arith.addf %214, %215 : vector<16x32xf32>
    %c1_73 = arith.constant 1 : index
    %c0_74 = arith.constant 0 : index
    %c0_75 = arith.constant 0 : index
    %217 = vector.load %arg2[%c1_73, %c0_74, %c0_75] : memref<2x32x128xf32, #tpu.memory_space<vmem>>, vector<1x32x96xf32>
    %218 = vector.shape_cast %217 : vector<1x32x96xf32> to vector<32x96xf32>
    %c1_76 = arith.constant 1 : index
    %c0_77 = arith.constant 0 : index
    %c96_78 = arith.constant 96 : index
    %219 = vector.load %arg2[%c1_76, %c0_77, %c96_78] : memref<2x32x128xf32, #tpu.memory_space<vmem>>, vector<1x32x32xf32>
    %220 = vector.shape_cast %219 : vector<1x32x32xf32> to vector<32x32xf32>
    %cst_79 = arith.constant dense<0.000000e+00> : vector<16x96xf32>
    %221 = tpu.matmul %216, %218, %cst_79 {dimension_numbers = #tpu.dot_dimension_numbers<[1], [0], [0], [1], [0, 0, 1, 1], [], []>} : vector<16x32xf32>, vector<32x96xf32>, vector<16x96xf32> -> vector<16x96xf32>
    %c20 = arith.constant 20 : index
    %c0_80 = arith.constant 0 : index
    %222 = vector.load %arg4[%c20, %c0_80] : memref<32x128xf32, #tpu.memory_space<vmem>>, vector<1x96xf32>
    %223 = vector.broadcast %222 : vector<1x96xf32> to vector<16x96xf32>
    %224 = arith.addf %221, %223 : vector<16x96xf32>
    %225 = vector.extract_strided_slice %224 {offsets = [0, 0], sizes = [16, 8], strides = [1, 1]} : vector<16x96xf32> to vector<16x8xf32>
    %226 = vector.shape_cast %225 : vector<16x8xf32> to vector<2x8x8xf32>
    %227 = vector.extract_strided_slice %224 {offsets = [0, 32], sizes = [16, 8], strides = [1, 1]} : vector<16x96xf32> to vector<16x8xf32>
    %228 = vector.shape_cast %227 : vector<16x8xf32> to vector<2x8x8xf32>
    %229 = vector.extract_strided_slice %224 {offsets = [0, 64], sizes = [16, 8], strides = [1, 1]} : vector<16x96xf32> to vector<16x8xf32>
    %230 = vector.shape_cast %229 : vector<16x8xf32> to vector<2x8x8xf32>
    "tpu.trace_start"() <{level = 10 : i32, message = "bqd,bkd->bqk"}> : () -> ()
    %cst_81 = arith.constant dense<0.000000e+00> : vector<2x8x8xf32>
    %231 = tpu.matmul %226, %228, %cst_81 {dimension_numbers = #tpu.dot_dimension_numbers<[2], [2], [1], [1], [0, 0, 0, 1, 1, 1], [0], [0]>} : vector<2x8x8xf32>, vector<2x8x8xf32>, vector<2x8x8xf32> -> vector<2x8x8xf32>
    "tpu.trace_stop"() : () -> ()
    %cst_82 = arith.constant 0.353553385 : f32
    %232 = vector.broadcast %cst_82 : f32 to vector<2x8x8xf32>
    %233 = arith.mulf %231, %232 : vector<2x8x8xf32>
    %234 = vector.broadcast %21 : vector<1x1x8xf32> to vector<2x8x8xf32>
    %235 = arith.addf %233, %234 : vector<2x8x8xf32>
    %cst_83 = arith.constant dense<0xFF800000> : vector<2x8xf32>
    %236 = vector.multi_reduction <maximumf>, %235, %cst_83 [2] : vector<2x8x8xf32> to vector<2x8xf32>
    %237 = vector.shape_cast %236 : vector<2x8xf32> to vector<2x8x1xf32>
    %238 = vector.broadcast %237 : vector<2x8x1xf32> to vector<2x8x8xf32>
    %239 = arith.subf %235, %238 : vector<2x8x8xf32>
    %240 = math.exp %239 : vector<2x8x8xf32>
    %cst_84 = arith.constant dense<0.000000e+00> : vector<2x8xf32>
    %241 = vector.multi_reduction <add>, %240, %cst_84 [2] : vector<2x8x8xf32> to vector<2x8xf32>
    %242 = vector.shape_cast %241 : vector<2x8xf32> to vector<2x8x1xf32>
    %243 = vector.broadcast %242 : vector<2x8x1xf32> to vector<2x8x8xf32>
    %244 = arith.divf %240, %243 : vector<2x8x8xf32>
    "tpu.trace_start"() <{level = 10 : i32, message = "bqk,bkd->bqd"}> : () -> ()
    %cst_85 = arith.constant dense<0.000000e+00> : vector<2x8x8xf32>
    %245 = tpu.matmul %244, %230, %cst_85 {dimension_numbers = #tpu.dot_dimension_numbers<[2], [1], [1], [2], [0, 0, 0, 1, 1, 2], [0], [0]>} : vector<2x8x8xf32>, vector<2x8x8xf32>, vector<2x8x8xf32> -> vector<2x8x8xf32>
    "tpu.trace_stop"() : () -> ()
    %246 = vector.shape_cast %245 : vector<2x8x8xf32> to vector<16x8xf32>
    %247 = vector.extract_strided_slice %224 {offsets = [0, 8], sizes = [16, 8], strides = [1, 1]} : vector<16x96xf32> to vector<16x8xf32>
    %248 = vector.shape_cast %247 : vector<16x8xf32> to vector<2x8x8xf32>
    %249 = vector.extract_strided_slice %224 {offsets = [0, 40], sizes = [16, 8], strides = [1, 1]} : vector<16x96xf32> to vector<16x8xf32>
    %250 = vector.shape_cast %249 : vector<16x8xf32> to vector<2x8x8xf32>
    %251 = vector.extract_strided_slice %224 {offsets = [0, 72], sizes = [16, 8], strides = [1, 1]} : vector<16x96xf32> to vector<16x8xf32>
    %252 = vector.shape_cast %251 : vector<16x8xf32> to vector<2x8x8xf32>
    "tpu.trace_start"() <{level = 10 : i32, message = "bqd,bkd->bqk"}> : () -> ()
    %cst_86 = arith.constant dense<0.000000e+00> : vector<2x8x8xf32>
    %253 = tpu.matmul %248, %250, %cst_86 {dimension_numbers = #tpu.dot_dimension_numbers<[2], [2], [1], [1], [0, 0, 0, 1, 1, 1], [0], [0]>} : vector<2x8x8xf32>, vector<2x8x8xf32>, vector<2x8x8xf32> -> vector<2x8x8xf32>
    "tpu.trace_stop"() : () -> ()
    %cst_87 = arith.constant 0.353553385 : f32
    %254 = vector.broadcast %cst_87 : f32 to vector<2x8x8xf32>
    %255 = arith.mulf %253, %254 : vector<2x8x8xf32>
    %256 = vector.broadcast %21 : vector<1x1x8xf32> to vector<2x8x8xf32>
    %257 = arith.addf %255, %256 : vector<2x8x8xf32>
    %cst_88 = arith.constant dense<0xFF800000> : vector<2x8xf32>
    %258 = vector.multi_reduction <maximumf>, %257, %cst_88 [2] : vector<2x8x8xf32> to vector<2x8xf32>
    %259 = vector.shape_cast %258 : vector<2x8xf32> to vector<2x8x1xf32>
    %260 = vector.broadcast %259 : vector<2x8x1xf32> to vector<2x8x8xf32>
    %261 = arith.subf %257, %260 : vector<2x8x8xf32>
    %262 = math.exp %261 : vector<2x8x8xf32>
    %cst_89 = arith.constant dense<0.000000e+00> : vector<2x8xf32>
    %263 = vector.multi_reduction <add>, %262, %cst_89 [2] : vector<2x8x8xf32> to vector<2x8xf32>
    %264 = vector.shape_cast %263 : vector<2x8xf32> to vector<2x8x1xf32>
    %265 = vector.broadcast %264 : vector<2x8x1xf32> to vector<2x8x8xf32>
    %266 = arith.divf %262, %265 : vector<2x8x8xf32>
    "tpu.trace_start"() <{level = 10 : i32, message = "bqk,bkd->bqd"}> : () -> ()
    %cst_90 = arith.constant dense<0.000000e+00> : vector<2x8x8xf32>
    %267 = tpu.matmul %266, %252, %cst_90 {dimension_numbers = #tpu.dot_dimension_numbers<[2], [1], [1], [2], [0, 0, 0, 1, 1, 2], [0], [0]>} : vector<2x8x8xf32>, vector<2x8x8xf32>, vector<2x8x8xf32> -> vector<2x8x8xf32>
    "tpu.trace_stop"() : () -> ()
    %268 = vector.shape_cast %267 : vector<2x8x8xf32> to vector<16x8xf32>
    %269 = vector.extract_strided_slice %224 {offsets = [0, 16], sizes = [16, 8], strides = [1, 1]} : vector<16x96xf32> to vector<16x8xf32>
    %270 = vector.shape_cast %269 : vector<16x8xf32> to vector<2x8x8xf32>
    %271 = vector.extract_strided_slice %224 {offsets = [0, 48], sizes = [16, 8], strides = [1, 1]} : vector<16x96xf32> to vector<16x8xf32>
    %272 = vector.shape_cast %271 : vector<16x8xf32> to vector<2x8x8xf32>
    %273 = vector.extract_strided_slice %224 {offsets = [0, 80], sizes = [16, 8], strides = [1, 1]} : vector<16x96xf32> to vector<16x8xf32>
    %274 = vector.shape_cast %273 : vector<16x8xf32> to vector<2x8x8xf32>
    "tpu.trace_start"() <{level = 10 : i32, message = "bqd,bkd->bqk"}> : () -> ()
    %cst_91 = arith.constant dense<0.000000e+00> : vector<2x8x8xf32>
    %275 = tpu.matmul %270, %272, %cst_91 {dimension_numbers = #tpu.dot_dimension_numbers<[2], [2], [1], [1], [0, 0, 0, 1, 1, 1], [0], [0]>} : vector<2x8x8xf32>, vector<2x8x8xf32>, vector<2x8x8xf32> -> vector<2x8x8xf32>
    "tpu.trace_stop"() : () -> ()
    %cst_92 = arith.constant 0.353553385 : f32
    %276 = vector.broadcast %cst_92 : f32 to vector<2x8x8xf32>
    %277 = arith.mulf %275, %276 : vector<2x8x8xf32>
    %278 = vector.broadcast %21 : vector<1x1x8xf32> to vector<2x8x8xf32>
    %279 = arith.addf %277, %278 : vector<2x8x8xf32>
    %cst_93 = arith.constant dense<0xFF800000> : vector<2x8xf32>
    %280 = vector.multi_reduction <maximumf>, %279, %cst_93 [2] : vector<2x8x8xf32> to vector<2x8xf32>
    %281 = vector.shape_cast %280 : vector<2x8xf32> to vector<2x8x1xf32>
    %282 = vector.broadcast %281 : vector<2x8x1xf32> to vector<2x8x8xf32>
    %283 = arith.subf %279, %282 : vector<2x8x8xf32>
    %284 = math.exp %283 : vector<2x8x8xf32>
    %cst_94 = arith.constant dense<0.000000e+00> : vector<2x8xf32>
    %285 = vector.multi_reduction <add>, %284, %cst_94 [2] : vector<2x8x8xf32> to vector<2x8xf32>
    %286 = vector.shape_cast %285 : vector<2x8xf32> to vector<2x8x1xf32>
    %287 = vector.broadcast %286 : vector<2x8x1xf32> to vector<2x8x8xf32>
    %288 = arith.divf %284, %287 : vector<2x8x8xf32>
    "tpu.trace_start"() <{level = 10 : i32, message = "bqk,bkd->bqd"}> : () -> ()
    %cst_95 = arith.constant dense<0.000000e+00> : vector<2x8x8xf32>
    %289 = tpu.matmul %288, %274, %cst_95 {dimension_numbers = #tpu.dot_dimension_numbers<[2], [1], [1], [2], [0, 0, 0, 1, 1, 2], [0], [0]>} : vector<2x8x8xf32>, vector<2x8x8xf32>, vector<2x8x8xf32> -> vector<2x8x8xf32>
    "tpu.trace_stop"() : () -> ()
    %290 = vector.shape_cast %289 : vector<2x8x8xf32> to vector<16x8xf32>
    %291 = vector.extract_strided_slice %224 {offsets = [0, 24], sizes = [16, 8], strides = [1, 1]} : vector<16x96xf32> to vector<16x8xf32>
    %292 = vector.shape_cast %291 : vector<16x8xf32> to vector<2x8x8xf32>
    %293 = vector.extract_strided_slice %224 {offsets = [0, 56], sizes = [16, 8], strides = [1, 1]} : vector<16x96xf32> to vector<16x8xf32>
    %294 = vector.shape_cast %293 : vector<16x8xf32> to vector<2x8x8xf32>
    %295 = vector.extract_strided_slice %224 {offsets = [0, 88], sizes = [16, 8], strides = [1, 1]} : vector<16x96xf32> to vector<16x8xf32>
    %296 = vector.shape_cast %295 : vector<16x8xf32> to vector<2x8x8xf32>
    "tpu.trace_start"() <{level = 10 : i32, message = "bqd,bkd->bqk"}> : () -> ()
    %cst_96 = arith.constant dense<0.000000e+00> : vector<2x8x8xf32>
    %297 = tpu.matmul %292, %294, %cst_96 {dimension_numbers = #tpu.dot_dimension_numbers<[2], [2], [1], [1], [0, 0, 0, 1, 1, 1], [0], [0]>} : vector<2x8x8xf32>, vector<2x8x8xf32>, vector<2x8x8xf32> -> vector<2x8x8xf32>
    "tpu.trace_stop"() : () -> ()
    %cst_97 = arith.constant 0.353553385 : f32
    %298 = vector.broadcast %cst_97 : f32 to vector<2x8x8xf32>
    %299 = arith.mulf %297, %298 : vector<2x8x8xf32>
    %300 = vector.broadcast %21 : vector<1x1x8xf32> to vector<2x8x8xf32>
    %301 = arith.addf %299, %300 : vector<2x8x8xf32>
    %cst_98 = arith.constant dense<0xFF800000> : vector<2x8xf32>
    %302 = vector.multi_reduction <maximumf>, %301, %cst_98 [2] : vector<2x8x8xf32> to vector<2x8xf32>
    %303 = vector.shape_cast %302 : vector<2x8xf32> to vector<2x8x1xf32>
    %304 = vector.broadcast %303 : vector<2x8x1xf32> to vector<2x8x8xf32>
    %305 = arith.subf %301, %304 : vector<2x8x8xf32>
    %306 = math.exp %305 : vector<2x8x8xf32>
    %cst_99 = arith.constant dense<0.000000e+00> : vector<2x8xf32>
    %307 = vector.multi_reduction <add>, %306, %cst_99 [2] : vector<2x8x8xf32> to vector<2x8xf32>
    %308 = vector.shape_cast %307 : vector<2x8xf32> to vector<2x8x1xf32>
    %309 = vector.broadcast %308 : vector<2x8x1xf32> to vector<2x8x8xf32>
    %310 = arith.divf %306, %309 : vector<2x8x8xf32>
    "tpu.trace_start"() <{level = 10 : i32, message = "bqk,bkd->bqd"}> : () -> ()
    %cst_100 = arith.constant dense<0.000000e+00> : vector<2x8x8xf32>
    %311 = tpu.matmul %310, %296, %cst_100 {dimension_numbers = #tpu.dot_dimension_numbers<[2], [1], [1], [2], [0, 0, 0, 1, 1, 2], [0], [0]>} : vector<2x8x8xf32>, vector<2x8x8xf32>, vector<2x8x8xf32> -> vector<2x8x8xf32>
    "tpu.trace_stop"() : () -> ()
    %312 = vector.shape_cast %311 : vector<2x8x8xf32> to vector<16x8xf32>
    %313 = tpu.concatenate %246, %268, %290, %312 in 1 : vector<16x8xf32>, vector<16x8xf32>, vector<16x8xf32>, vector<16x8xf32> -> vector<16x32xf32>
    %cst_101 = arith.constant dense<0.000000e+00> : vector<16x32xf32>
    %314 = tpu.matmul %313, %220, %cst_101 {dimension_numbers = #tpu.dot_dimension_numbers<[1], [0], [0], [1], [0, 0, 1, 1], [], []>} : vector<16x32xf32>, vector<32x32xf32>, vector<16x32xf32> -> vector<16x32xf32>
    %c21 = arith.constant 21 : index
    %c0_102 = arith.constant 0 : index
    %315 = vector.load %arg4[%c21, %c0_102] : memref<32x128xf32, #tpu.memory_space<vmem>>, vector<1x32xf32>
    %316 = vector.broadcast %315 : vector<1x32xf32> to vector<16x32xf32>
    %317 = arith.addf %314, %316 : vector<16x32xf32>
    %318 = arith.addf %192, %317 : vector<16x32xf32>
    %c22 = arith.constant 22 : index
    %c0_103 = arith.constant 0 : index
    %319 = vector.load %arg4[%c22, %c0_103] : memref<32x128xf32, #tpu.memory_space<vmem>>, vector<1x32xf32>
    %c23 = arith.constant 23 : index
    %c0_104 = arith.constant 0 : index
    %320 = vector.load %arg4[%c23, %c0_104] : memref<32x128xf32, #tpu.memory_space<vmem>>, vector<1x32xf32>
    %cst_105 = arith.constant dense<0.000000e+00> : vector<16xf32>
    %321 = vector.multi_reduction <add>, %318, %cst_105 [1] : vector<16x32xf32> to vector<16xf32>
    %322 = vector.shape_cast %321 : vector<16xf32> to vector<16x1xf32>
    %cst_106 = arith.constant 3.200000e+01 : f32
    %323 = vector.broadcast %cst_106 : f32 to vector<16x1xf32>
    %324 = arith.divf %322, %323 : vector<16x1xf32>
    %325 = vector.broadcast %324 : vector<16x1xf32> to vector<16x32xf32>
    %326 = arith.subf %318, %325 : vector<16x32xf32>
    %327 = arith.mulf %326, %326 : vector<16x32xf32>
    %cst_107 = arith.constant dense<0.000000e+00> : vector<16xf32>
    %328 = vector.multi_reduction <add>, %327, %cst_107 [1] : vector<16x32xf32> to vector<16xf32>
    %329 = vector.shape_cast %328 : vector<16xf32> to vector<16x1xf32>
    %cst_108 = arith.constant 3.200000e+01 : f32
    %330 = vector.broadcast %cst_108 : f32 to vector<16x1xf32>
    %331 = arith.divf %329, %330 : vector<16x1xf32>
    %332 = vector.broadcast %324 : vector<16x1xf32> to vector<16x32xf32>
    %333 = arith.subf %318, %332 : vector<16x32xf32>
    %cst_109 = arith.constant 9.99999996E-13 : f32
    %334 = vector.broadcast %cst_109 : f32 to vector<16x1xf32>
    %335 = arith.addf %331, %334 : vector<16x1xf32>
    %336 = math.rsqrt %335 : vector<16x1xf32>
    %337 = vector.broadcast %336 : vector<16x1xf32> to vector<16x32xf32>
    %338 = arith.mulf %333, %337 : vector<16x32xf32>
    %339 = vector.broadcast %319 : vector<1x32xf32> to vector<16x32xf32>
    %340 = arith.mulf %338, %339 : vector<16x32xf32>
    %341 = vector.broadcast %320 : vector<1x32xf32> to vector<16x32xf32>
    %342 = arith.addf %340, %341 : vector<16x32xf32>
    %c1_110 = arith.constant 1 : index
    %c0_111 = arith.constant 0 : index
    %c0_112 = arith.constant 0 : index
    %343 = vector.load %arg3[%c1_110, %c0_111, %c0_112] : memref<2x96x64xf32, #tpu.memory_space<vmem>>, vector<1x32x64xf32>
    %344 = vector.shape_cast %343 : vector<1x32x64xf32> to vector<32x64xf32>
    %c1_113 = arith.constant 1 : index
    %c32_114 = arith.constant 32 : index
    %c0_115 = arith.constant 0 : index
    %345 = vector.load %arg3[%c1_113, %c32_114, %c0_115] : memref<2x96x64xf32, #tpu.memory_space<vmem>>, vector<1x64x32xf32>
    %346 = vector.shape_cast %345 : vector<1x64x32xf32> to vector<64x32xf32>
    %cst_116 = arith.constant dense<0.000000e+00> : vector<16x64xf32>
    %347 = tpu.matmul %342, %344, %cst_116 {dimension_numbers = #tpu.dot_dimension_numbers<[1], [0], [0], [1], [0, 0, 1, 1], [], []>} : vector<16x32xf32>, vector<32x64xf32>, vector<16x64xf32> -> vector<16x64xf32>
    %c24 = arith.constant 24 : index
    %c0_117 = arith.constant 0 : index
    %348 = vector.load %arg4[%c24, %c0_117] : memref<32x128xf32, #tpu.memory_space<vmem>>, vector<1x64xf32>
    %349 = vector.broadcast %348 : vector<1x64xf32> to vector<16x64xf32>
    %350 = arith.addf %347, %349 : vector<16x64xf32>
    %cst_118 = arith.constant 5.000000e-01 : f32
    %351 = vector.broadcast %cst_118 : f32 to vector<16x64xf32>
    %352 = arith.mulf %351, %350 : vector<16x64xf32>
    %cst_119 = arith.constant 0.707106769 : f32
    %353 = vector.broadcast %cst_119 : f32 to vector<16x64xf32>
    %354 = arith.mulf %350, %353 : vector<16x64xf32>
    %355 = math.erf %354 : vector<16x64xf32>
    %cst_120 = arith.constant 1.000000e+00 : f32
    %356 = vector.broadcast %cst_120 : f32 to vector<16x64xf32>
    %357 = arith.addf %356, %355 : vector<16x64xf32>
    %358 = arith.mulf %352, %357 : vector<16x64xf32>
    %cst_121 = arith.constant dense<0.000000e+00> : vector<16x32xf32>
    %359 = tpu.matmul %358, %346, %cst_121 {dimension_numbers = #tpu.dot_dimension_numbers<[1], [0], [0], [1], [0, 0, 1, 1], [], []>} : vector<16x64xf32>, vector<64x32xf32>, vector<16x32xf32> -> vector<16x32xf32>
    %c25 = arith.constant 25 : index
    %c0_122 = arith.constant 0 : index
    %360 = vector.load %arg4[%c25, %c0_122] : memref<32x128xf32, #tpu.memory_space<vmem>>, vector<1x32xf32>
    %361 = vector.broadcast %360 : vector<1x32xf32> to vector<16x32xf32>
    %362 = arith.addf %359, %361 : vector<16x32xf32>
    %363 = arith.addf %318, %362 : vector<16x32xf32>
    %364 = vector.extract_strided_slice %363 {offsets = [0, 0], sizes = [1, 32], strides = [1, 1]} : vector<16x32xf32> to vector<1x32xf32>
    %365 = vector.extract_strided_slice %363 {offsets = [8, 0], sizes = [1, 32], strides = [1, 1]} : vector<16x32xf32> to vector<1x32xf32>
    %366 = tpu.concatenate %364, %365 in 0 : vector<1x32xf32>, vector<1x32xf32> -> vector<2x32xf32>
    %c7 = arith.constant 7 : index
    %c0_123 = arith.constant 0 : index
    %367 = vector.load %arg4[%c7, %c0_123] : memref<32x128xf32, #tpu.memory_space<vmem>>, vector<1x32xf32>
    %c8 = arith.constant 8 : index
    %c0_124 = arith.constant 0 : index
    %368 = vector.load %arg4[%c8, %c0_124] : memref<32x128xf32, #tpu.memory_space<vmem>>, vector<1x32xf32>
    %cst_125 = arith.constant dense<0.000000e+00> : vector<2xf32>
    %369 = vector.multi_reduction <add>, %366, %cst_125 [1] : vector<2x32xf32> to vector<2xf32>
    %370 = vector.shape_cast %369 : vector<2xf32> to vector<2x1xf32>
    %cst_126 = arith.constant 3.200000e+01 : f32
    %371 = vector.broadcast %cst_126 : f32 to vector<2x1xf32>
    %372 = arith.divf %370, %371 : vector<2x1xf32>
    %373 = vector.broadcast %372 : vector<2x1xf32> to vector<2x32xf32>
    %374 = arith.subf %366, %373 : vector<2x32xf32>
    %375 = arith.mulf %374, %374 : vector<2x32xf32>
    %cst_127 = arith.constant dense<0.000000e+00> : vector<2xf32>
    %376 = vector.multi_reduction <add>, %375, %cst_127 [1] : vector<2x32xf32> to vector<2xf32>
    %377 = vector.shape_cast %376 : vector<2xf32> to vector<2x1xf32>
    %cst_128 = arith.constant 3.200000e+01 : f32
    %378 = vector.broadcast %cst_128 : f32 to vector<2x1xf32>
    %379 = arith.divf %377, %378 : vector<2x1xf32>
    %380 = vector.broadcast %372 : vector<2x1xf32> to vector<2x32xf32>
    %381 = arith.subf %366, %380 : vector<2x32xf32>
    %cst_129 = arith.constant 9.99999996E-13 : f32
    %382 = vector.broadcast %cst_129 : f32 to vector<2x1xf32>
    %383 = arith.addf %379, %382 : vector<2x1xf32>
    %384 = math.rsqrt %383 : vector<2x1xf32>
    %385 = vector.broadcast %384 : vector<2x1xf32> to vector<2x32xf32>
    %386 = arith.mulf %381, %385 : vector<2x32xf32>
    %387 = vector.broadcast %367 : vector<1x32xf32> to vector<2x32xf32>
    %388 = arith.mulf %386, %387 : vector<2x32xf32>
    %389 = vector.broadcast %368 : vector<1x32xf32> to vector<2x32xf32>
    %390 = arith.addf %388, %389 : vector<2x32xf32>
    %c192 = arith.constant 192 : index
    %c0_130 = arith.constant 0 : index
    %391 = vector.load %arg1[%c192, %c0_130] : memref<224x32xf32, #tpu.memory_space<vmem>>, vector<32x3xf32>
    %cst_131 = arith.constant dense<0.000000e+00> : vector<2x3xf32>
    %392 = tpu.matmul %390, %391, %cst_131 {dimension_numbers = #tpu.dot_dimension_numbers<[1], [0], [0], [1], [0, 0, 1, 1], [], []>} : vector<2x32xf32>, vector<32x3xf32>, vector<2x3xf32> -> vector<2x3xf32>
    %c9 = arith.constant 9 : index
    %c0_132 = arith.constant 0 : index
    %393 = vector.load %arg4[%c9, %c0_132] : memref<32x128xf32, #tpu.memory_space<vmem>>, vector<1x3xf32>
    %394 = vector.broadcast %393 : vector<1x3xf32> to vector<2x3xf32>
    %395 = arith.addf %392, %394 : vector<2x3xf32>
    %c0_133 = arith.constant 0 : index
    %c0_134 = arith.constant 0 : index
    %396 = vector.load %arg5[%c0_133, %c0_134] : memref<2x3xf32, #tpu.memory_space<vmem>>, vector<2x3xf32>
    tpu.vector_store %arg5[%c0_133, %c0_134], %395 {strides = array<i32>} : memref<2x3xf32, #tpu.memory_space<vmem>>, vector<2x3xf32>,
    return
  }
}

</mosaic_0001>

<bundles_post_ra>
// kernel: fine_tuned_vit_forward.1
= control target key start
LH: loop header
LB: loop body
LE: loop exit
PB: predicated region body
PF: predicated region fallthrough
CT: control target
= control target key end

     0   :  { %v4587_v1 = vmov 0.0   ;;  %vm52_vm0 = vcmask 523264   ;;  %s5391_s0 = inlined_call_operand.vmem [shape: f32[8,192], index: 0, kind: input, shape index: {}]   ;;  %s5392_s1 = inlined_call_operand.vmem [shape: f32[224,32], index: 1, kind: input, shape index: {}]   ;;  %s5393_s2 = inlined_call_operand.vmem [shape: f32[2,32,128], index: 2, kind: input, shape index: {}]   ;;  %s5394_s3 = inlined_call_operand.vmem [shape: f32[2,96,64], index: 3, kind: input, shape index: {}]   ;;  %s5395_s4 = inlined_call_operand.vmem [shape: f32[32,128], index: 4, kind: input, shape index: {}]   ;;  %s5396_s5 = inlined_call_operand.hbm [shape: f32[2,3], index: 5, kind: output, shape index: {}]  }
   0x1   :  { %v36_v0 = vld [vmem:[%s5392_s1 + $0x78] sm:$0xff]  ;;  %56 = vmatprep.subr.mxu0 %v4587_v1  ;;  %v35_v2 = vld [vmem:[%s5392_s1 + $0x70] sm:$0xff]  ;;  %v34_v3 = vld [vmem:[%s5392_s1 + $0x68] sm:$0xff] }
   0x2   :  { %57 = vmatpush1.msra.mxu0 %v36_v0  ;;  %v33_v4 = vld [vmem:[%s5392_s1 + $0x60] sm:$0xff]  ;;  %v32_v5 = vld [vmem:[%s5392_s1 + $0x58] sm:$0xff]  ;;  %v47_v6 = vld [vmem:[%s5391_s0 + $0x8] sm:$0xff] }
   0x3   :  { %58 = vmatprep.subr.mxu0 %v4587_v1  ;;  %v31_v7 = vld [vmem:[%s5392_s1 + $0x50] sm:$0xff]  ;;  %3955 = vmatprep.mubr.msk.f32.mxu0 %vm52_vm0, %v47_v6 }
   0x4   :  { %59 = vmatpush1.msra.mxu0 %v35_v2 }
   0x5   :  { %60 = vmatprep.subr.mxu0 %v4587_v1 }
   0x6   :  { %61 = vmatpush1.msra.mxu0 %v34_v3 }
   0x7   :  { %62 = vmatprep.subr.mxu0 %v4587_v1 }
   0x8   :  { %63 = vmatpush1.msra.mxu0 %v33_v4 }
   0x9   :  { %64 = vmatprep.subr.mxu0 %v4587_v1 }
   0xa   :  { %10 = vsyncpa [#allocation3], 0  ;;  %65 = vmatpush1.msra.mxu0 %v32_v5  ;;  %v30_v8 = vld [vmem:[%s5392_s1 + $0x48] sm:$0xff]  ;;  %v29_v9 = vld [vmem:[%s5392_s1 + $0x40] sm:$0xff]  ;;  %vm141_vm1 = vcmask 1040384   ;;  %vm143_vm2 = vcmask 1044480  }
   0xb   :  { %66 = vmatprep.subr.mxu0 %v4587_v1  ;;  %v28_v10 = vld [vmem:[%s5392_s1 + $0x38] sm:$0xff]  ;;  %v27_v11 = vld [vmem:[%s5392_s1 + $0x30] sm:$0xff]  ;;  %v26_v12 = vld [vmem:[%s5392_s1 + $0x28] sm:$0xff]  ;;  %vm153_vm3 = vcmask 261120   ;;  %vm4588_vm4 = vmmov 0   ;;  %s4589_s16 = smov 96  }
   0xc   :  { %67 = vmatpush1.msra.mxu0 %v31_v7  ;;  %v25_v13 = vld [vmem:[%s5392_s1 + $0x20] sm:$0xff]  ;;  %v24_v14 = vld [vmem:[%s5392_s1 + $0x18] sm:$0xff]  ;;  %v23_v15 = vld [vmem:[%s5392_s1 + $0x10] sm:$0xff]  ;;  %vm286_vm5 = vcmask 64512   ;;  %s4591_s17 = smov 64   ;;  %s4592_s18 = smov 88  }
   0xd   :  { %68 = vmatprep.subr.mxu0 %v4587_v1  ;;  %v22_v16 = vld [vmem:[%s5392_s1 + $0x8] sm:$0xff]  ;;  %v21_v17 = vld [vmem:[%s5392_s1] sm:$0xff]  ;;  %v44_v18 = vld [vmem:[%s5392_s1 + $0xb8] sm:$0xff]  ;;  %s4593_s19 = smov 120   ;;  %s4594_s20 = smov 56   ;;  %vm1644_vm7 = vcmask 130048  }
   0xe   :  { %69 = vmatpush1.msra.mxu0 %v30_v8  ;;  %v43_v19 = vld [vmem:[%s5392_s1 + $0xb0] sm:$0xff]  ;;  %v42_v20 = vld [vmem:[%s5392_s1 + $0xa8] sm:$0xff]  ;;  %v41_v21 = vld [vmem:[%s5392_s1 + $0xa0] sm:$0xff]  ;;  %s4595_s21 = smov 80   ;;  %s4596_s22 = smov 112   ;;  %vm1647_vm8 = vcmask 195584  }
   0xf   :  { %70 = vmatprep.subr.mxu0 %v4587_v1  ;;  %v40_v22 = vld [vmem:[%s5392_s1 + $0x98] sm:$0xff]  ;;  %v39_v23 = vld [vmem:[%s5392_s1 + $0x90] sm:$0xff]  ;;  %v38_v24 = vld [vmem:[%s5392_s1 + $0x88] sm:$0xff]  ;;  %s4597_s23 = smov 48   ;;  %s4598_s24 = smov 72   ;;  %vm3832_vm9 = vcmask 254976  }
  0x10   :  { %71 = vmatpush1.msra.mxu0 %v29_v9  ;;  %v37_v25 = vld [vmem:[%s5392_s1 + $0x80] sm:$0xff]  ;;  %v4769_v56 = vld [vmem:[%s5393_s2 + $0x18] sm:$0xff]  ;;  %v4774_v57 = vld [vmem:[%s5393_s2 + $0x10] sm:$0xff]  ;;  %s4599_s25 = smov 104   ;;  %s4601_s26 = smov 32   ;;  %vm3938_vm10 = vcmask 17408  }
  0x11   :  { %72 = vmatprep.subr.mxu0 %v4587_v1  ;;  %v46_v26 = vld [vmem:[%s5391_s0] sm:$0xff]  ;;  %4181 = vmatprep.subr.mxu1 %v4769_v56  ;;  %v4781_v58 = vld [vmem:[%s5393_s2 + $0x8] sm:$0xff]  ;;  %s4600_s0 = smov 40   ;;  %s4602_s27 = smov 16  }
  0x12   :  { %73 = vmatpush1.msra.mxu0 %v28_v10  ;;  %v129_v27 = vld [vmem:[%s5395_s4 + $0x3] sm:$0xf]  ;;  %v3954_v28 = vld [vmem:[%s5395_s4] ss:$0 sm:$0xff]  ;;  %v126_v31 = vld [vmem:[%s5395_s4 + $0x1] sm:$0x1]  ;;  %4182 = vmatpush3.msra.mxu1 %v4769_v56 }
  0x13   :  { %74 = vmatprep.subr.mxu0 %v4587_v1  ;;  %v132_v29 = vrot.slane %v129_v27, 4  ;;  %v127_v32 = vld [vmem:[%s5395_s4 + $0x2] sm:$0x1]  ;;  %4183 = vmatprep.subr.mxu1 %v4774_v57  ;;  %v3956_v4 = vld [vmem:[%s5395_s4 + $0xa] ss:$0 sm:$0xff]  ;;  %s4603_s28 = smov 8  }
  0x14   :  { %75 = vmatpush1.msra.mxu0 %v27_v11  ;;  %v128_v37 = vadd.f32 %v127_v32, %v126_v31  ;;  %4184 = vmatpush3.msra.mxu1 %v4774_v57  ;;  %v4790_v59 = vld [vmem:[%s5393_s2] sm:$0xff]  ;;  %v3957_v6 = vld [vmem:[%s5395_s4 + $0xb] ss:$0 sm:$0xff]  ;;  %s4604_s29 = smov 24   ;;  %s4605_s12 = smov [#allocation2]  }
  0x15   :  { %76 = vmatprep.subr.mxu0 %v4587_v1  ;;  %4185 = vmatprep.subr.mxu1 %v4781_v58  ;;  %s3946_s13 = sshll.u32 %s4605_s12, 4  ;;  %s3947_s13 = int_to_ptr.vmem [resolvable:$true] %s3946_s13 }
  0x16   :  { %77 = vmatpush1.msra.mxu0 %v26_v12  ;;  %4186 = vmatpush3.msra.mxu1 %v4781_v58  ;;  %p4570_p1 = scmp.lt.s32.totalorder %s3947_s13, %s3947_s13 }
  0x17   :  { %78 = vmatprep.subr.mxu0 %v4587_v1  ;;  %4187 = vmatprep.subr.mxu1 %v4790_v59 }
  0x18   :  { %79 = vmatpush1.msra.mxu0 %v25_v13  ;;  %4188 = vmatpush3.msra.mxu1 %v4790_v59  ;;  %v3958_v13 = vld [vmem:[%s5395_s4 + $0xc] ss:$0 sm:$0xff] }
  0x19   :  { %80 = vmatprep.subr.mxu0 %v4587_v1  ;;  %4192 = vmatprep.subr.mxu1 %v4587_v1 }
  0x1a   :  { %81 = vmatpush1.msra.mxu0 %v24_v14 }
  0x1b   :  { %82 = vmatprep.subr.mxu0 %v4587_v1 }
  0x1c   :  { %83 = vmatpush1.msra.mxu0 %v23_v15 }
  0x1d   :  { %84 = vmatprep.subr.mxu0 %v4587_v1 }
  0x1e   :  { %85 = vmatpush1.msra.mxu0 %v22_v16 }
  0x1f   :  { %86 = vmatprep.subr.mxu0 %v4587_v1 }
  0x20   :  { %87 = vmatpush1.msra.mxu0 %v21_v17 }
  0x21   :  { %104 = vmatprep.subr.mxu0 %v4587_v1 }
  0x22   :  { %105 = vmatpush2.msra.mxu0 %v44_v18 }
  0x23   :  { %106 = vmatprep.subr.mxu0 %v4587_v1 }
  0x24   :  { %107 = vmatpush2.msra.mxu0 %v43_v19 }
  0x25   :  { %108 = vmatprep.subr.mxu0 %v4587_v1 }
  0x26   :  { %109 = vmatpush2.msra.mxu0 %v42_v20  ;;  %v147_v20 = vlaneseq }
  0x27   :  { %110 = vmatprep.subr.mxu0 %v4587_v1 }
  0x28   :  { %111 = vmatpush2.msra.mxu0 %v41_v21  ;;  %v148_v21 = vand.u32 127, %v147_v20 }
  0x29   :  { %112 = vmatprep.subr.mxu0 %v4587_v1 }
  0x2a   :  { %113 = vmatpush2.msra.mxu0 %v40_v22  ;;  %vm149_vm6 = vcmp.lt.s32.totalorder %v148_v21, 5 }
  0x2b   :  { %114 = vmatprep.subr.mxu0 %v4587_v1 }
  0x2c   :  { %115 = vmatpush2.msra.mxu0 %v39_v23  ;;  %v4590_v23 = vmov -1e+30  }
  0x2d   :  { %116 = vmatprep.subr.mxu0 %v4587_v1 }
  0x2e   :  { %117 = vmatpush2.msra.mxu0 %v38_v24  ;;  %v4830_v24 = vsel %vm149_vm6, 0.0, %v4590_v23 }
  0x2f   :  { %118 = vmatprep.subr.mxu0 %v4587_v1 }
  0x30   :  { %119 = vmatpush2.msra.mxu0 %v37_v25 }
  0x31   :  { %121 = vmatmul.mubr.f32.vlgmr.msra.gmra.mxu0 %v46_v26  ;;  %4252 = vmatprep.subr.mxu0 %v4587_v1 }
  0x32   :  { %4254 = vmatprep.mubr.msk.f32.mxu0 %vm4588_vm4, %v4587_v1 }
  0xf1   :  { %v122_v30 = vpop.f32.mrf.mxu0 }
  0xf2   :  { %v123_v33 = vadd.f32 %v3954_v28, %v122_v30 }
  0xf3   :  { %v124_v34 = vpop.f32.mrf.mxu0 }
  0xf4   :  { %v130_v35 = vadd.f32 %v129_v27, %v123_v33  ;;  %v134_v36 = vadd.f32 %v132_v29, %v123_v33 }
  0xf6   :  { %v136_v38 = vrot.slane %v130_v35, 7  ;;  %v139_v39 = vrot.slane %v134_v36, 3 }
  0xf8   :  { %v142_v40 = vsel %vm141_vm1, %v128_v37, %v136_v38  ;;  %v145_v41 = vsel %vm141_vm1, %v128_v37, %v139_v39 }
  0xf9   :  { %v4754_v42 = vsel %vm143_vm2, %v142_v40, 0.0  ;;  %v4758_v44 = vsel %vm143_vm2, %v145_v41, 0.0 }
  0xfa   :  { %v154_v43 = vsel %vm153_vm3, %v4754_v42, 0.0  ;;  %v157_v45 = vsel %vm153_vm3, %v4758_v44, 0.0 }
  0xfb   :  { %155 = vadd.xlane.f32.xlu0 %v154_v43 }
  0xff   :  { %158 = vadd.xlane.f32.xlu0 %v157_v45 }
 0x184   :  { %v156_v46 = vpop.xlane.xlu0 %155 }
 0x185   :  { %v161_v47 = vmul.f32 0.03125, %v156_v46 }
 0x187   :  { %v163_v48 = vsub.f32 %v4754_v42, %v161_v47 }
 0x188   :  { %v159_v49 = vpop.xlane.xlu0 %158 }
 0x189   :  { %v162_v50 = vmul.f32 0.03125, %v159_v49  ;;  %v165_v51 = vmul.f32 %v163_v48, %v163_v48 }
 0x18b   :  { %v164_v52 = vsub.f32 %v4758_v44, %v162_v50  ;;  %v167_v53 = vsel %vm153_vm3, %v165_v51, 0.0 }
 0x18c   :  { %168 = vadd.xlane.f32.xlu1 %v167_v53 }
 0x18d   :  { %v166_v54 = vmul.f32 %v164_v52, %v164_v52 }
 0x18f   :  { %v170_v55 = vsel %vm153_vm3, %v166_v54, 0.0 }
 0x190   :  { %171 = vadd.xlane.f32.xlu1 %v170_v55 }
 0x215   :  { %v169_v60 = vpop.xlane.xlu1 %168 }
 0x216   :  { %v173_v61 = vmul.f32 0.03125, %v169_v60 }
 0x218   :  { %v175_v62 = vadd.f32 1e-12, %v173_v61 }
 0x219   :  { %v172_v63 = vpop.xlane.xlu1 %171 }
 0x21a   :  { %4475 = vrsqrt.f32 %v175_v62  ;;  %v174_v0 = vmul.f32 0.03125, %v172_v63 }
 0x21c   :  { %v176_v2 = vadd.f32 1e-12, %v174_v0 }
 0x21e   :  { %4477 = vrsqrt.f32 %v176_v2 }
 0x227   :  { %v4476_v3 = vpop.eup %4475 }
 0x228   :  { %v179_v5 = vmul.f32 %v4476_v3, %v163_v48 }
 0x22a   :  { %v185_v7 = vmul.f32 %v3956_v4, %v179_v5 }
 0x22b   :  { %v4478_v8 = vpop.eup %4477 }
 0x22c   :  { %v180_v9 = vmul.f32 %v4478_v8, %v164_v52  ;;  %v191_v10 = vadd.f32 %v3957_v6, %v185_v7 }
 0x22e   :  { %v186_v11 = vmul.f32 %v3956_v4, %v180_v9  ;;  %4189 = vmatprep.mubr.msk.f32.mxu1 %vm153_vm3, %v191_v10 }
 0x230   :  { %v192_v12 = vadd.f32 %v3957_v6, %v186_v11 }
 0x232   :  { %4190 = vmatmul.mubr.msk.f32.vlgmr.msra.gmra.mxu1 %vm153_vm3, %v192_v12 }
 0x233   :  { %4194 = vmatprep.mubr.msk.f32.mxu1 %vm4588_vm4, %v4587_v1 }
 0x2f2   :  { %v4191_v14 = vpop.f32.mrf.mxu1 }
 0x2f3   :  { %v4810_v15 = vadd.f32 %v4191_v14, %v3958_v13 }
 0x2f4   :  { %v274_v16 = vpop.f32.mrf.mxu1 }
 0x2f5   :  { %v4812_v17 = vadd.f32 %v3958_v13, %v274_v16  ;;  %362 = vrot.lane.b32.xlu1 %v4810_v15, %s4589_s16 }
 0x2f7   :  { %284 = vrot.lane.b32.xlu0 %v4812_v17, %s4589_s16 }
 0x367   :  { %v363_v19 = vpop.permute.xlu1 %362 }
 0x369   :  { %v285_v18 = vpop.permute.xlu0 %284 }
 0x36a   :  { %4193 = vmatpush3.xpose.msk.msra.mxu1 %vm286_vm5, %v285_v18 }
 0x36b   :  { %4197 = vmatprep.subr.mxu1 %v4587_v1 }
 0x36d   :  { %4195 = vmatmul.mubr.msk.f32.vlgmr.msra.gmra.mxu1 %vm286_vm5, %v4812_v17 }
 0x36e   :  { %4198 = vmatpush3.xpose.msk.msra.mxu1 %vm286_vm5, %v363_v19  ;;  %4199 = vmatprep.mubr.msk.f32.mxu1 %vm4588_vm4, %v4587_v1 }
 0x36f   :  { %4202 = vmatprep.subr.mxu1 %v4587_v1 }
 0x371   :  { %4200 = vmatmul.mubr.msk.f32.vlgmr.msra.gmra.mxu1 %vm286_vm5, %v4810_v15 }
 0x372   :  { %4204 = vmatprep.mubr.msk.f32.mxu1 %vm4588_vm4, %v4587_v1 }
 0x42d   :  { %v357_v22 = vpop.f32.mrf.mxu1 }
 0x42e   :  { %v438_v25 = vmul.f32 0.35355338, %v357_v22 }
 0x42f   :  { %v4196_v26 = vpop.f32.mrf.mxu1 }
 0x430   :  { %v440_v27 = vadd.f32 %v438_v25, %v4830_v24 }
 0x431   :  { %v434_v28 = vpop.f32.mrf.mxu1 }
 0x432   :  { %v439_v29 = vmul.f32 0.35355338, %v434_v28  ;;  %v442_v30 = vsel %vm286_vm5, %v440_v27, -inf }
 0x433   :  { %443 = vmax.xlane.f32.xlu1 %v442_v30  ;;  %v4201_v31 = vpop.f32.mrf.mxu1 }
 0x434   :  { %v441_v32 = vadd.f32 %v439_v29, %v4830_v24 }
 0x436   :  { %v445_v33 = vsel %vm286_vm5, %v441_v32, -inf }
 0x437   :  { %446 = vmax.xlane.f32.xlu0 %v445_v33 }
 0x444   :  { %540 = vrot.lane.b32.xlu1 %v4810_v15, %s4591_s17 }
 0x448   :  { %618 = vrot.lane.b32.xlu1 %v4812_v17, %s4592_s18 }
 0x44c   :  { %616 = vrot.lane.b32.xlu1 %v4812_v17, %s4593_s19 }
 0x4bc   :  { %v444_v34 = vpop.xlane.xlu1 %443 }
 0x4bd   :  { %v448_v35 = vsub.f32 %v440_v27, %v444_v34 }
 0x4bf   :  { %v450_v36 = vmul.f32 1.442695, %v448_v35 }
 0x4c0   :  { %v447_v37 = vpop.xlane.xlu0 %446  ;;  %v541_v46 = vpop.permute.xlu1 %540 }
 0x4c1   :  { %4479 = vpow2.f32 %v450_v36  ;;  %v449_v38 = vsub.f32 %v441_v32, %v447_v37 }
 0x4c3   :  { %v452_v39 = vmul.f32 1.442695, %v449_v38 }
 0x4c4   :  { %v619_v47 = vpop.permute.xlu1 %618 }
 0x4c5   :  { %4481 = vpow2.f32 %v452_v39 }
 0x4c8   :  { %v617_v48 = vpop.permute.xlu1 %616 }
 0x4ce   :  { %v4480_v40 = vpop.eup %4479 }
 0x4cf   :  { %v454_v41 = vsel %vm286_vm5, %v4480_v40, 0.0 }
 0x4d0   :  { %455 = vadd.xlane.f32.xlu0 %v454_v41 }
 0x4d2   :  { %v4482_v43 = vpop.eup %4481 }
 0x4d3   :  { %v457_v45 = vsel %vm286_vm5, %v4482_v43, 0.0 }
 0x4d4   :  { %458 = vadd.xlane.f32.xlu1 %v457_v45 }
 0x4e5   :  { %694 = vrot.lane.b32.xlu1 %v4810_v15, %s4593_s19 }
 0x4e6   :  { %464 = vrot.lane.b32.xlu0 %v4812_v17, %s4591_s17 }
 0x4ea   :  { %696 = vrot.lane.b32.xlu0 %v4810_v15, %s4592_s18 }
 0x559   :  { %v456_v49 = vpop.xlane.xlu0 %455 }
 0x55a   :  { %4483 = vrcp.f32 %v456_v49 }
 0x55d   :  { %v459_v50 = vpop.xlane.xlu1 %458  ;;  %v465_v51 = vpop.permute.xlu0 %464 }
 0x55e   :  { %4485 = vrcp.f32 %v459_v50  ;;  %4203 = vmatpush3.msra.mxu1 %v465_v51 }
 0x55f   :  { %4207 = vmatprep.subr.mxu1 %v4587_v1 }
 0x561   :  { %v697_v60 = vpop.permute.xlu0 %696  ;;  %v695_v61 = vpop.permute.xlu1 %694 }
 0x567   :  { %v4484_v52 = vpop.eup %4483 }
 0x568   :  { %v461_v53 = vmul.f32 %v4484_v52, %v4480_v40 }
 0x56a   :  { %4205 = vmatmul.mubr.msk.f32.vlgmr.msra.gmra.mxu1 %vm286_vm5, %v461_v53 }
 0x56b   :  { %v4486_v54 = vpop.eup %4485  ;;  %4208 = vmatpush3.msra.mxu1 %v541_v46  ;;  %4209 = vmatprep.mubr.msk.f32.mxu1 %vm4588_vm4, %v4587_v1 }
 0x56c   :  { %4212 = vmatprep.subr.mxu1 %v4587_v1  ;;  %v463_v55 = vmul.f32 %v4486_v54, %v4482_v43 }
 0x56e   :  { %4210 = vmatmul.mubr.msk.f32.vlgmr.msra.gmra.mxu1 %vm286_vm5, %v463_v55 }
 0x56f   :  { %4213 = vmatpush3.xpose.msk.msra.mxu1 %vm286_vm5, %v619_v47  ;;  %4214 = vmatprep.mubr.msk.f32.mxu1 %vm4588_vm4, %v4587_v1 }
 0x570   :  { %4217 = vmatprep.subr.mxu1 %v4587_v1 }
 0x572   :  { %4215 = vmatmul.mubr.msk.f32.vlgmr.msra.gmra.mxu1 %vm286_vm5, %v617_v48 }
 0x573   :  { %4218 = vmatpush3.xpose.msk.msra.mxu1 %vm286_vm5, %v697_v60  ;;  %4219 = vmatprep.mubr.msk.f32.mxu1 %vm4588_vm4, %v4587_v1 }
 0x574   :  { %4222 = vmatprep.subr.mxu1 %v4587_v1 }
 0x576   :  { %4220 = vmatmul.mubr.msk.f32.vlgmr.msra.gmra.mxu1 %vm286_vm5, %v695_v61 }
 0x577   :  { %4224 = vmatprep.mubr.msk.f32.mxu1 %vm4588_vm4, %v4587_v1 }
 0x62a   :  { %v4868_v62 = vpop.f32.mrf.mxu1 }
 0x62c   :  { %v4206_v63 = vpop.f32.mrf.mxu1 }
 0x62e   :  { %v4870_v0 = vpop.f32.mrf.mxu1 }
 0x630   :  { %v4211_v2 = vpop.f32.mrf.mxu1 }
 0x632   :  { %v690_v3 = vpop.f32.mrf.mxu1 }
 0x633   :  { %v772_v4 = vmul.f32 0.35355338, %v690_v3 }
 0x634   :  { %v4216_v5 = vpop.f32.mrf.mxu1 }
 0x635   :  { %v774_v6 = vadd.f32 %v772_v4, %v4830_v24 }
 0x636   :  { %v768_v7 = vpop.f32.mrf.mxu1 }
 0x637   :  { %v773_v8 = vmul.f32 0.35355338, %v768_v7  ;;  %v776_v9 = vsel %vm286_vm5, %v774_v6, -inf }
 0x638   :  { %777 = vmax.xlane.f32.xlu0 %v776_v9  ;;  %v4221_v10 = vpop.f32.mrf.mxu1 }
 0x639   :  { %v775_v11 = vadd.f32 %v773_v8, %v4830_v24 }
 0x63b   :  { %v779_v12 = vsel %vm286_vm5, %v775_v11, -inf }
 0x63c   :  { %780 = vmax.xlane.f32.xlu1 %v779_v12 }
 0x64d   :  { %874 = vrot.lane.b32.xlu1 %v4810_v15, %s4594_s20 }
 0x651   :  { %952 = vrot.lane.b32.xlu1 %v4812_v17, %s4595_s21 }
 0x655   :  { %950 = vrot.lane.b32.xlu1 %v4812_v17, %s4596_s22 }
 0x659   :  { %1028 = vrot.lane.b32.xlu1 %v4810_v15, %s4596_s22 }
 0x6c1   :  { %v778_v13 = vpop.xlane.xlu0 %777 }
 0x6c2   :  { %v782_v14 = vsub.f32 %v774_v6, %v778_v13 }
 0x6c4   :  { %v784_v16 = vmul.f32 1.442695, %v782_v14 }
 0x6c5   :  { %v781_v18 = vpop.xlane.xlu1 %780 }
 0x6c6   :  { %4487 = vpow2.f32 %v784_v16  ;;  %v783_v19 = vsub.f32 %v775_v11, %v781_v18 }
 0x6c8   :  { %v786_v20 = vmul.f32 1.442695, %v783_v19 }
 0x6c9   :  { %v875_v29 = vpop.permute.xlu1 %874 }
 0x6ca   :  { %4489 = vpow2.f32 %v786_v20 }
 0x6cd   :  { %v953_v32 = vpop.permute.xlu1 %952 }
 0x6d1   :  { %v951_v35 = vpop.permute.xlu1 %950 }
 0x6d3   :  { %v4488_v21 = vpop.eup %4487 }
 0x6d4   :  { %v788_v22 = vsel %vm286_vm5, %v4488_v21, 0.0 }
 0x6d5   :  { %789 = vadd.xlane.f32.xlu0 %v788_v22  ;;  %v1029_v37 = vpop.permute.xlu1 %1028 }
 0x6d7   :  { %v4490_v23 = vpop.eup %4489 }
 0x6d8   :  { %v791_v25 = vsel %vm286_vm5, %v4490_v23, 0.0 }
 0x6d9   :  { %792 = vadd.xlane.f32.xlu0 %v791_v25 }
 0x6ef   :  { %798 = vrot.lane.b32.xlu0 %v4812_v17, %s4594_s20 }
 0x6f3   :  { %1030 = vrot.lane.b32.xlu0 %v4810_v15, %s4595_s21 }
 0x75e   :  { %v790_v26 = vpop.xlane.xlu0 %789 }
 0x75f   :  { %4491 = vrcp.f32 %v790_v26 }
 0x762   :  { %v793_v27 = vpop.xlane.xlu0 %792 }
 0x763   :  { %4493 = vrcp.f32 %v793_v27 }
 0x766   :  { %v799_v28 = vpop.permute.xlu0 %798 }
 0x767   :  { %4223 = vmatpush3.msra.mxu1 %v799_v28 }
 0x768   :  { %4227 = vmatprep.subr.mxu1 %v4587_v1 }
 0x76a   :  { %v1031_v36 = vpop.permute.xlu0 %1030 }
 0x76c   :  { %v4492_v30 = vpop.eup %4491 }
 0x76d   :  { %v795_v31 = vmul.f32 %v4492_v30, %v4488_v21 }
 0x76f   :  { %4225 = vmatmul.mubr.msk.f32.vlgmr.msra.gmra.mxu1 %vm286_vm5, %v795_v31 }
 0x770   :  { %v4494_v33 = vpop.eup %4493  ;;  %4228 = vmatpush3.msra.mxu1 %v875_v29  ;;  %4229 = vmatprep.mubr.msk.f32.mxu1 %vm4588_vm4, %v4587_v1 }
 0x771   :  { %4232 = vmatprep.subr.mxu1 %v4587_v1  ;;  %v797_v34 = vmul.f32 %v4494_v33, %v4490_v23 }
 0x773   :  { %4230 = vmatmul.mubr.msk.f32.vlgmr.msra.gmra.mxu1 %vm286_vm5, %v797_v34 }
 0x774   :  { %4233 = vmatpush3.xpose.msk.msra.mxu1 %vm286_vm5, %v953_v32  ;;  %4234 = vmatprep.mubr.msk.f32.mxu1 %vm4588_vm4, %v4587_v1 }
 0x775   :  { %4237 = vmatprep.subr.mxu1 %v4587_v1 }
 0x777   :  { %4235 = vmatmul.mubr.msk.f32.vlgmr.msra.gmra.mxu1 %vm286_vm5, %v951_v35 }
 0x778   :  { %4238 = vmatpush3.xpose.msk.msra.mxu1 %vm286_vm5, %v1031_v36  ;;  %4239 = vmatprep.mubr.msk.f32.mxu1 %vm4588_vm4, %v4587_v1 }
 0x779   :  { %4242 = vmatprep.subr.mxu1 %v4587_v1 }
 0x77b   :  { %4240 = vmatmul.mubr.msk.f32.vlgmr.msra.gmra.mxu1 %vm286_vm5, %v1029_v37 }
 0x77c   :  { %4244 = vmatprep.mubr.msk.f32.mxu1 %vm4588_vm4, %v4587_v1 }
 0x82f   :  { %v4908_v38 = vpop.f32.mrf.mxu1 }
 0x831   :  { %v4226_v39 = vpop.f32.mrf.mxu1 }
 0x833   :  { %v4910_v40 = vpop.f32.mrf.mxu1 }
 0x835   :  { %v4231_v41 = vpop.f32.mrf.mxu1 }
 0x837   :  { %v1024_v43 = vpop.f32.mrf.mxu1 }
 0x838   :  { %v1106_v45 = vmul.f32 0.35355338, %v1024_v43 }
 0x839   :  { %v4236_v46 = vpop.f32.mrf.mxu1 }
 0x83a   :  { %v1108_v47 = vadd.f32 %v1106_v45, %v4830_v24 }
 0x83b   :  { %v1102_v48 = vpop.f32.mrf.mxu1 }
 0x83c   :  { %v1107_v49 = vmul.f32 0.35355338, %v1102_v48  ;;  %v1110_v50 = vsel %vm286_vm5, %v1108_v47, -inf }
 0x83d   :  { %1111 = vmax.xlane.f32.xlu0 %v1110_v50  ;;  %v4241_v51 = vpop.f32.mrf.mxu1 }
 0x83e   :  { %v1109_v52 = vadd.f32 %v1107_v49, %v4830_v24 }
 0x840   :  { %v1113_v53 = vsel %vm286_vm5, %v1109_v52, -inf }
 0x841   :  { %1114 = vmax.xlane.f32.xlu1 %v1113_v53 }
 0x852   :  { %1208 = vrot.lane.b32.xlu1 %v4810_v15, %s4597_s23 }
 0x853   :  { %1132 = vrot.lane.b32.xlu0 %v4812_v17, %s4597_s23 }
 0x856   :  { %1286 = vrot.lane.b32.xlu1 %v4812_v17, %s4598_s24 }
 0x85a   :  { %1364 = vrot.lane.b32.xlu1 %v4810_v15, %s4598_s24 }
 0x85e   :  { %1362 = vrot.lane.b32.xlu1 %v4810_v15, %s4599_s25 }
 0x8c6   :  { %v1112_v54 = vpop.xlane.xlu0 %1111 }
 0x8c7   :  { %v1116_v55 = vsub.f32 %v1108_v47, %v1112_v54 }
 0x8c9   :  { %v1118_v60 = vmul.f32 1.442695, %v1116_v55 }
 0x8ca   :  { %v1133_v61 = vpop.permute.xlu0 %1132  ;;  %v1115_v63 = vpop.xlane.xlu1 %1114 }
 0x8cb   :  { %4495 = vpow2.f32 %v1118_v60  ;;  %v1117_v2 = vsub.f32 %v1109_v52, %v1115_v63  ;;  %4243 = vmatpush3.msra.mxu1 %v1133_v61 }
 0x8cc   :  { %4247 = vmatprep.subr.mxu1 %v4587_v1 }
 0x8cd   :  { %v1120_v3 = vmul.f32 1.442695, %v1117_v2 }
 0x8ce   :  { %v1209_v4 = vpop.permute.xlu1 %1208 }
 0x8cf   :  { %4497 = vpow2.f32 %v1120_v3 }
 0x8d2   :  { %v1287_v5 = vpop.permute.xlu1 %1286 }
 0x8d3   :  { %4253 = vmatpush3.xpose.msk.msra.mxu0 %vm286_vm5, %v1287_v5 }
 0x8d4   :  { %4262 = vmatprep.subr.mxu0 %v4587_v1 }
 0x8d6   :  { %v1365_v18 = vpop.permute.xlu1 %1364 }
 0x8d8   :  { %v4496_v6 = vpop.eup %4495 }
 0x8d9   :  { %v1122_v7 = vsel %vm286_vm5, %v4496_v6, 0.0 }
 0x8da   :  { %1123 = vadd.xlane.f32.xlu0 %v1122_v7  ;;  %v1363_v20 = vpop.permute.xlu1 %1362 }
 0x8dc   :  { %v4498_v8 = vpop.eup %4497 }
 0x8dd   :  { %v1125_v9 = vsel %vm286_vm5, %v4498_v8, 0.0 }
 0x8de   :  { %1126 = vadd.xlane.f32.xlu0 %v1125_v9 }
 0x8f4   :  { %1284 = vrot.lane.b32.xlu0 %v4812_v17, %s4599_s25 }
 0x963   :  { %v1124_v10 = vpop.xlane.xlu0 %1123 }
 0x964   :  { %4499 = vrcp.f32 %v1124_v10 }
 0x967   :  { %v1127_v11 = vpop.xlane.xlu0 %1126 }
 0x968   :  { %4501 = vrcp.f32 %v1127_v11 }
 0x96b   :  { %v1285_v12 = vpop.permute.xlu0 %1284 }
 0x96c   :  { %4255 = vmatmul.mubr.msk.f32.vlgmr.msra.gmra.mxu0 %vm286_vm5, %v1285_v12 }
 0x96d   :  { %4264 = vmatprep.mubr.msk.f32.mxu0 %vm4588_vm4, %v4587_v1 }
 0x971   :  { %v4500_v13 = vpop.eup %4499 }
 0x972   :  { %v1129_v14 = vmul.f32 %v4500_v13, %v4496_v6 }
 0x974   :  { %4245 = vmatmul.mubr.msk.f32.vlgmr.msra.gmra.mxu1 %vm286_vm5, %v1129_v14 }
 0x975   :  { %v4502_v16 = vpop.eup %4501  ;;  %4248 = vmatpush3.msra.mxu1 %v1209_v4  ;;  %4249 = vmatprep.mubr.msk.f32.mxu1 %vm4588_vm4, %v4587_v1 }
 0x976   :  { %4257 = vmatprep.subr.mxu1 %v4587_v1  ;;  %v1131_v19 = vmul.f32 %v4502_v16, %v4498_v8 }
 0x978   :  { %4250 = vmatmul.mubr.msk.f32.vlgmr.msra.gmra.mxu1 %vm286_vm5, %v1131_v19 }
 0x979   :  { %4258 = vmatpush3.xpose.msk.msra.mxu1 %vm286_vm5, %v1365_v18  ;;  %4259 = vmatprep.mubr.msk.f32.mxu1 %vm4588_vm4, %v4587_v1 }
 0x97a   :  { %4267 = vmatprep.subr.mxu1 %v4587_v1 }
 0x97c   :  { %4260 = vmatmul.mubr.msk.f32.vlgmr.msra.gmra.mxu1 %vm286_vm5, %v1363_v20 }
 0x97d   :  { %4269 = vmatprep.mubr.msk.f32.mxu1 %vm4588_vm4, %v4587_v1 }
 0xa2c   :  { %v1358_v21 = vpop.f32.mrf.mxu0 }
 0xa2d   :  { %v1440_v22 = vmul.f32 0.35355338, %v1358_v21 }
 0xa2e   :  { %v4256_v23 = vpop.f32.mrf.mxu0 }
 0xa2f   :  { %v1442_v25 = vadd.f32 %v1440_v22, %v4830_v24 }
 0xa31   :  { %v1444_v26 = vsel %vm286_vm5, %v1442_v25, -inf }
 0xa32   :  { %1445 = vmax.xlane.f32.xlu0 %v1444_v26 }
 0xa34   :  { %v1204_v27 = vpop.f32.mrf.mxu1 }
 0xa36   :  { %v4246_v28 = vpop.f32.mrf.mxu1 }
 0xa38   :  { %v1280_v29 = vpop.f32.mrf.mxu1 }
 0xa3a   :  { %v4251_v30 = vpop.f32.mrf.mxu1 }
 0xa3c   :  { %v1436_v31 = vpop.f32.mrf.mxu1 }
 0xa3d   :  { %v1441_v32 = vmul.f32 0.35355338, %v1436_v31  ;;  %v1797_v31 = vld [vmem:[%s5394_s3 + $0x18] sm:$0xff] }
 0xa3e   :  { %v4261_v33 = vpop.f32.mrf.mxu1 }
 0xa3f   :  { %v1443_v34 = vadd.f32 %v1441_v32, %v4830_v24  ;;  %v1796_v32 = vld [vmem:[%s5394_s3 + $0x10] sm:$0xff]  ;;  %v1795_v33 = vld [vmem:[%s5394_s3 + $0x8] sm:$0xff] }
 0xa41   :  { %v1447_v35 = vsel %vm286_vm5, %v1443_v34, -inf }
 0xa42   :  { %1448 = vmax.xlane.f32.xlu1 %v1447_v35 }
 0xa53   :  { %1542 = vrot.lane.b32.xlu1 %v4810_v15, %s4600_s0 }
 0xa57   :  { %1665 = vrot.lane.b32.xlu1 %v4769_v56, %s4601_s26 }
 0xa5b   :  { %1663 = vrot.lane.b32.xlu1 %v4774_v57, %s4601_s26 }
 0xa5f   :  { %1661 = vrot.lane.b32.xlu1 %v4781_v58, %s4601_s26 }
 0xa63   :  { %1628 = vrot.lane.b32.xlu1 %v1204_v27, %s4602_s27 }
 0xabb   :  { %v1446_v36 = vpop.xlane.xlu0 %1445 }
 0xabc   :  { %v1450_v37 = vsub.f32 %v1442_v25, %v1446_v36 }
 0xabe   :  { %v1452_v39 = vmul.f32 1.442695, %v1450_v37 }
 0xac0   :  { %4503 = vpow2.f32 %v1452_v39 }
 0xacb   :  { %v1449_v41 = vpop.xlane.xlu1 %1448 }
 0xacc   :  { %v1451_v43 = vsub.f32 %v1443_v34, %v1449_v41  ;;  %v1794_v34 = vld [vmem:[%s5394_s3] sm:$0xff] }
 0xacd   :  { %v4504_v15 = vpop.eup %4503 }
 0xace   :  { %v1454_v45 = vmul.f32 1.442695, %v1451_v43  ;;  %v1456_v46 = vsel %vm286_vm5, %v4504_v15, 0.0 }
 0xacf   :  { %1457 = vadd.xlane.f32.xlu0 %v1456_v46  ;;  %v1543_v56 = vpop.permute.xlu1 %1542 }
 0xad0   :  { %4505 = vpow2.f32 %v1454_v45  ;;  %4268 = vmatpush3.msra.mxu1 %v1543_v56  ;;  %v3988_v45 = vld [vmem:[%s5395_s4 + $0xe] ss:$0 sm:$0xff]  ;;  %v3989_v56 = vld [vmem:[%s5395_s4 + $0xf] ss:$0 sm:$0xff] }
 0xad1   :  { %4283 = vmatprep.subr.mxu1 %v1797_v31 }
 0xad3   :  { %v1666_v48 = vpop.permute.xlu1 %1665 }
 0xad7   :  { %v1664_v51 = vpop.permute.xlu1 %1663 }
 0xadd   :  { %v4506_v57 = vpop.eup %4505 }
 0xade   :  { %v1459_v58 = vsel %vm286_vm5, %v4506_v57, 0.0 }
 0xadf   :  { %1460 = vadd.xlane.f32.xlu0 %v1459_v58 }
 0xaf5   :  { %1466 = vrot.lane.b32.xlu0 %v4812_v17, %s4600_s0 }
 0xaf9   :  { %1620 = vrot.lane.b32.xlu0 %v4908_v38, %s4603_s28  ;;  %v1662_v38 = vpop.permute.xlu1 %1661 }
 0xafd   :  { %1622 = vrot.lane.b32.xlu0 %v4910_v40, %s4603_s28  ;;  %v1629_v4 = vpop.permute.xlu1 %1628 }
 0xb01   :  { %1630 = vrot.lane.b32.xlu0 %v1280_v29, %s4602_s27 }
 0xb05   :  { %1659 = vrot.lane.b32.xlu0 %v4790_v59, %s4601_s26 }
 0xb58   :  { %v1458_v47 = vpop.xlane.xlu0 %1457 }
 0xb59   :  { %4507 = vrcp.f32 %v1458_v47 }
 0xb66   :  { %v4508_v50 = vpop.eup %4507 }
 0xb67   :  { %v1463_v52 = vmul.f32 %v4508_v50, %v4504_v15 }
 0xb68   :  { %v1461_v49 = vpop.xlane.xlu0 %1460 }
 0xb69   :  { %4509 = vrcp.f32 %v1461_v49 }
 0xb6c   :  { %v1467_v17 = vpop.permute.xlu0 %1466 }
 0xb6d   :  { %4263 = vmatpush3.msra.mxu0 %v1467_v17  ;;  %v1804_v17 = vld [vmem:[%s5394_s3 + $0x50] sm:$0xff] }
 0xb6e   :  { %4265 = vmatmul.mubr.msk.f32.vlgmr.msra.gmra.mxu0 %vm286_vm5, %v1463_v52  ;;  %4272 = vmatprep.subr.mxu0 %v1666_v48  ;;  %v1803_v52 = vld [vmem:[%s5394_s3 + $0x48] sm:$0xff] }
 0xb6f   :  { %4273 = vmatpush3.msra.mxu0 %v1666_v48 }
 0xb70   :  { %4274 = vmatprep.subr.mxu0 %v1664_v51  ;;  %v1621_v53 = vpop.permute.xlu0 %1620 }
 0xb71   :  { %4275 = vmatpush3.msra.mxu0 %v1664_v51  ;;  %v1642_v5 = vsel %vm286_vm5, %v4868_v62, %v1621_v53  ;;  %v3985_v62 = vld [vmem:[%s5395_s4 + $0xd] ss:$0 sm:$0xff]  ;;  %v1805_v51 = vld [vmem:[%s5394_s3 + $0x58] sm:$0xff] }
 0xb72   :  { %4276 = vmatprep.subr.mxu0 %v1662_v38  ;;  %v1645_v6 = vsel %vm1644_vm7, %v1642_v5, %v1629_v4  ;;  %v1799_v53 = vld [vmem:[%s5394_s3 + $0x28] sm:$0xff] }
 0xb73   :  { %4277 = vmatpush3.msra.mxu0 %v1662_v38  ;;  %v1802_v38 = vld [vmem:[%s5394_s3 + $0x40] sm:$0xff] }
 0xb74   :  { %v1623_v54 = vpop.permute.xlu0 %1622 }
 0xb75   :  { %v1643_v9 = vsel %vm286_vm5, %v4870_v0, %v1623_v54  ;;  %v1798_v54 = vld [vmem:[%s5394_s3 + $0x20] sm:$0xff] }
 0xb76   :  { %v4510_v59 = vpop.eup %4509 }
 0xb77   :  { %v1465_v40 = vmul.f32 %v4510_v59, %v4506_v57  ;;  %v1801_v59 = vld [vmem:[%s5394_s3 + $0x38] sm:$0xff] }
 0xb78   :  { %v1631_v55 = vpop.permute.xlu0 %1630 }
 0xb79   :  { %4270 = vmatmul.mubr.msk.f32.vlgmr.msra.gmra.mxu1 %vm286_vm5, %v1465_v40  ;;  %v1646_v10 = vsel %vm1644_vm7, %v1643_v9, %v1631_v55  ;;  %v1800_v40 = vld [vmem:[%s5394_s3 + $0x30] sm:$0xff] }
 0xb7a   :  { %4284 = vmatpush3.msra.mxu1 %v1797_v31  ;;  %v3990_v55 = vld [vmem:[%s5395_s4 + $0x10] ss:$0 sm:$0xff]  ;;  %v5075_v31 = vld [vmem:[%s5393_s2 + $0x38] sm:$0xff] }
 0xb7b   :  { %4285 = vmatprep.subr.mxu1 %v1796_v32 }
 0xb7c   :  { %v1660_v60 = vpop.permute.xlu0 %1659  ;;  %4286 = vmatpush3.msra.mxu1 %v1796_v32  ;;  %v5080_v32 = vld [vmem:[%s5393_s2 + $0x30] sm:$0xff] }
 0xb7d   :  { %4278 = vmatprep.subr.mxu0 %v1660_v60  ;;  %4287 = vmatprep.subr.mxu1 %v1795_v33 }
 0xb7e   :  { %4279 = vmatpush3.msra.mxu0 %v1660_v60  ;;  %4288 = vmatpush3.msra.mxu1 %v1795_v33  ;;  %v5087_v33 = vld [vmem:[%s5393_s2 + $0x28] sm:$0xff] }
 0xb7f   :  { %4289 = vmatprep.subr.mxu1 %v1794_v34  ;;  %4294 = vmatprep.subr.mxu0 %v1805_v51 }
 0xb80   :  { %4290 = vmatpush3.msra.mxu1 %v1794_v34  ;;  %v5094_v34 = vld [vmem:[%s5393_s2 + $0x20] sm:$0xff]  ;;  %s4565_s2 = scalar_lea.vmem %s3947_s13, 32 }
 0xb81   :  { %4313 = vmatprep.subr.mxu1 %v5075_v31  ;;  %p4566_p0 = scmp.ne.s32.totalorder %s3947_s13, %s4565_s2  ;;  %p4571_p2 = scmp.lt.s32.totalorder %s4565_s2, %s4565_s2 }
 0xb83   :  { %p4572_p3 = por %p4571_p2, %p4570_p1 }
 0xb85   :  { %p4573_p4 = pnand %p4572_p3, %p4566_p0 }
 0xc2e   :  { %v1538_v61 = vpop.f32.mrf.mxu0 }
 0xc2f   :  { %1636 = vrot.lane.b32.xlu1 %v1538_v61, %s4604_s29 }
 0xc30   :  { %v4266_v63 = vpop.f32.mrf.mxu0 }
 0xc39   :  { %v1614_v2 = vpop.f32.mrf.mxu1 }
 0xc3a   :  { %1638 = vrot.lane.b32.xlu1 %v1614_v2, %s4604_s29 }
 0xc3b   :  { %v4271_v3 = vpop.f32.mrf.mxu1 }
 0xca1   :  { %v1637_v7 = vpop.permute.xlu1 %1636 }
 0xca2   :  { %v1648_v8 = vsel %vm1647_vm8, %v1645_v6, %v1637_v7 }
 0xca3   :  { %4280 = vmatprep.mubr.msk.f32.mxu0 %vm153_vm3, %v1648_v8 }
 0xcac   :  { %v1639_v11 = vpop.permute.xlu1 %1638 }
 0xcad   :  { %v1649_v12 = vsel %vm1647_vm8, %v1646_v10, %v1639_v11 }
 0xcae   :  { %4281 = vmatmul.mubr.msk.f32.vlgmr.msra.gmra.mxu0 %vm153_vm3, %v1649_v12 }
 0xcaf   :  { %4295 = vmatpush3.msra.mxu0 %v1805_v51  ;;  %v4002_v51 = vld [vmem:[%s5395_s4 + $0x14] ss:$0 sm:$0xff] }
 0xcb0   :  { %4296 = vmatprep.subr.mxu0 %v1804_v17 }
 0xcb1   :  { %4297 = vmatpush3.msra.mxu0 %v1804_v17 }
 0xcb2   :  { %4298 = vmatprep.subr.mxu0 %v1803_v52 }
 0xcb3   :  { %4299 = vmatpush3.msra.mxu0 %v1803_v52 }
 0xcb4   :  { %4300 = vmatprep.subr.mxu0 %v1802_v38 }
 0xcb5   :  { %4301 = vmatpush3.msra.mxu0 %v1802_v38 }
 0xcb6   :  { %4302 = vmatprep.subr.mxu0 %v1801_v59 }
 0xcb7   :  { %4303 = vmatpush3.msra.mxu0 %v1801_v59 }
 0xcb8   :  { %4304 = vmatprep.subr.mxu0 %v1800_v40 }
 0xcb9   :  { %4305 = vmatpush3.msra.mxu0 %v1800_v40 }
 0xcba   :  { %4306 = vmatprep.subr.mxu0 %v1799_v53 }
 0xcbb   :  { %4307 = vmatpush3.msra.mxu0 %v1799_v53 }
 0xcbc   :  { %4308 = vmatprep.subr.mxu0 %v1798_v54 }
 0xcbd   :  { %4309 = vmatpush3.msra.mxu0 %v1798_v54 }
 0xcbe   :  { %4334 = vmatprep.subr.mxu0 %v4587_v1 }
 0xd6e   :  { %v4282_v13 = vpop.f32.mrf.mxu0 }
 0xd6f   :  { %v1749_v14 = vadd.f32 %v4282_v13, %v3985_v62 }
 0xd70   :  { %v1743_v16 = vpop.f32.mrf.mxu0 }
 0xd71   :  { %v4990_v18 = vadd.f32 %v1749_v14, %v4758_v44  ;;  %v1744_v19 = vadd.f32 %v3985_v62, %v1743_v16  ;;  %v3993_v62 = vld [vmem:[%s5395_s4 + $0x11] ss:$0 sm:$0xff] }
 0xd73   :  { %v4993_v0 = vadd.f32 %v1744_v19, %v4754_v42  ;;  %v1759_v20 = vsel %vm153_vm3, %v4990_v18, 0.0 }
 0xd74   :  { %1760 = vadd.xlane.f32.xlu1 %v1759_v20 }
 0xd75   :  { %v1756_v21 = vsel %vm153_vm3, %v4993_v0, 0.0 }
 0xd76   :  { %1757 = vadd.xlane.f32.xlu0 %v1756_v21 }
 0xdfd   :  { %v1761_v22 = vpop.xlane.xlu1 %1760 }
 0xdfe   :  { %v1763_v23 = vmul.f32 0.03125, %v1761_v22 }
 0xdff   :  { %v1758_v25 = vpop.xlane.xlu0 %1757 }
 0xe00   :  { %v1762_v26 = vmul.f32 0.03125, %v1758_v25  ;;  %v1765_v27 = vsub.f32 %v4990_v18, %v1763_v23 }
 0xe02   :  { %v1764_v44 = vsub.f32 %v4993_v0, %v1762_v26  ;;  %v1767_v29 = vmul.f32 %v1765_v27, %v1765_v27 }
 0xe04   :  { %v1766_v28 = vmul.f32 %v1764_v44, %v1764_v44  ;;  %v1771_v30 = vsel %vm153_vm3, %v1767_v29, 0.0 }
 0xe06   :  { %v1768_v42 = vsel %vm153_vm3, %v1766_v28, 0.0 }
 0xe07   :  { %1769 = vadd.xlane.f32.xlu0 %v1768_v42 }
 0xe0b   :  { %1772 = vadd.xlane.f32.xlu0 %v1771_v30 }
 0xe90   :  { %v1770_v35 = vpop.xlane.xlu0 %1769 }
 0xe91   :  { %v1774_v36 = vmul.f32 0.03125, %v1770_v35 }
 0xe93   :  { %v1776_v37 = vadd.f32 1e-12, %v1774_v36 }
 0xe94   :  { %v1773_v39 = vpop.xlane.xlu0 %1772 }
 0xe95   :  { %4511 = vrsqrt.f32 %v1776_v37  ;;  %v1775_v41 = vmul.f32 0.03125, %v1773_v39 }
 0xe97   :  { %v1777_v43 = vadd.f32 1e-12, %v1775_v41 }
 0xe99   :  { %4513 = vrsqrt.f32 %v1777_v43 }
 0xea2   :  { %v4512_v15 = vpop.eup %4511 }
 0xea3   :  { %v1780_v46 = vmul.f32 %v4512_v15, %v1764_v44 }
 0xea5   :  { %v1786_v57 = vmul.f32 %v3988_v45, %v1780_v46 }
 0xea6   :  { %v4514_v58 = vpop.eup %4513 }
 0xea7   :  { %v1781_v47 = vmul.f32 %v4514_v58, %v1765_v27  ;;  %v1792_v48 = vadd.f32 %v3989_v56, %v1786_v57 }
 0xea9   :  { %v1787_v49 = vmul.f32 %v3988_v45, %v1781_v47  ;;  %4291 = vmatprep.mubr.msk.f32.mxu1 %vm153_vm3, %v1792_v48  ;;  %v3996_v45 = vld [vmem:[%s5395_s4 + $0x12] ss:$0 sm:$0xff]  ;;  %v3997_v47 = vld [vmem:[%s5395_s4 + $0x13] ss:$0 sm:$0xff] }
 0xeab   :  { %v1793_v50 = vadd.f32 %v3989_v56, %v1787_v49 }
 0xead   :  { %4292 = vmatmul.mubr.msk.f32.vlgmr.msra.gmra.mxu1 %vm153_vm3, %v1793_v50 }
 0xeae   :  { %4314 = vmatpush3.msra.mxu1 %v5075_v31 }
 0xeaf   :  { %4315 = vmatprep.subr.mxu1 %v5080_v32 }
 0xeb0   :  { %4316 = vmatpush3.msra.mxu1 %v5080_v32 }
 0xeb1   :  { %4317 = vmatprep.subr.mxu1 %v5087_v33 }
 0xeb2   :  { %4318 = vmatpush3.msra.mxu1 %v5087_v33 }
 0xeb3   :  { %4319 = vmatprep.subr.mxu1 %v5094_v34 }
 0xeb4   :  { %4320 = vmatpush3.msra.mxu1 %v5094_v34 }
 0xeb5   :  { %4324 = vmatprep.subr.mxu1 %v4587_v1 }
 0xf6d   :  { %v4293_v60 = vpop.f32.mrf.mxu1 }
 0xf6e   :  { %v1889_v61 = vadd.f32 %v4293_v60, %v3990_v55 }
 0xf6f   :  { %v1883_v63 = vpop.f32.mrf.mxu1 }
 0xf70   :  { %v1895_v2 = vmul.f32 0.70710677, %v1889_v61  ;;  %v1884_v3 = vadd.f32 %v3990_v55, %v1883_v63  ;;  %v1893_v10 = vmul.f32 0.5, %v1889_v61 }
 0xf72   :  { %4515 = verf.f32 %v1895_v2  ;;  %v1894_v4 = vmul.f32 0.70710677, %v1884_v3  ;;  %v1892_v8 = vmul.f32 0.5, %v1884_v3 }
 0xf74   :  { %4517 = verf.f32 %v1894_v4 }
 0xf7f   :  { %v4516_v5 = vpop.eup %4515 }
 0xf80   :  { %v1899_v7 = vadd.f32 1.0, %v4516_v5 }
 0xf81   :  { %v4518_v6 = vpop.eup %4517 }
 0xf82   :  { %v1898_v9 = vadd.f32 1.0, %v4518_v6  ;;  %v1901_v12 = vmul.f32 %v1899_v7, %v1893_v10 }
 0xf84   :  { %v1900_v11 = vmul.f32 %v1898_v9, %v1892_v8 }
 0xf86   :  { %4310 = vmatprep.mubr.msk.f32.mxu0 %vm52_vm0, %v1900_v11 }
 0xf87   :  { %4311 = vmatmul.mubr.msk.f32.vlgmr.msra.gmra.mxu0 %vm52_vm0, %v1901_v12 }
 0xf88   :  { %4336 = vmatprep.mubr.msk.f32.mxu0 %vm4588_vm4, %v4587_v1 }
0x1047   :  { %v4312_v13 = vpop.f32.mrf.mxu0 }
0x1048   :  { %v1985_v14 = vadd.f32 %v4312_v13, %v3993_v62 }
0x1049   :  { %v1979_v16 = vpop.f32.mrf.mxu0 }
0x104a   :  { %v5059_v19 = vadd.f32 %v1985_v14, %v4990_v18  ;;  %v1980_v20 = vadd.f32 %v3993_v62, %v1979_v16 }
0x104c   :  { %v5062_v21 = vadd.f32 %v1980_v20, %v4993_v0  ;;  %v1995_v22 = vsel %vm153_vm3, %v5059_v19, 0.0 }
0x104d   :  { %1996 = vadd.xlane.f32.xlu1 %v1995_v22 }
0x104e   :  { %v1992_v23 = vsel %vm153_vm3, %v5062_v21, 0.0 }
0x104f   :  { %1993 = vadd.xlane.f32.xlu0 %v1992_v23 }
0x10d6   :  { %v1997_v25 = vpop.xlane.xlu1 %1996 }
0x10d7   :  { %v1999_v26 = vmul.f32 0.03125, %v1997_v25 }
0x10d8   :  { %v1994_v27 = vpop.xlane.xlu0 %1993 }
0x10d9   :  { %v2001_v44 = vsub.f32 %v5059_v19, %v1999_v26  ;;  %v1998_v28 = vmul.f32 0.03125, %v1994_v27 }
0x10db   :  { %v2000_v18 = vsub.f32 %v5062_v21, %v1998_v28  ;;  %v2003_v42 = vmul.f32 %v2001_v44, %v2001_v44 }
0x10dd   :  { %v2007_v0 = vsel %vm153_vm3, %v2003_v42, 0.0  ;;  %v2002_v29 = vmul.f32 %v2000_v18, %v2000_v18 }
0x10de   :  { %2008 = vadd.xlane.f32.xlu1 %v2007_v0 }
0x10df   :  { %v2004_v30 = vsel %vm153_vm3, %v2002_v29, 0.0 }
0x10e0   :  { %2005 = vadd.xlane.f32.xlu0 %v2004_v30 }
0x1167   :  { %v2009_v35 = vpop.xlane.xlu1 %2008 }
0x1168   :  { %v2011_v36 = vmul.f32 0.03125, %v2009_v35 }
0x1169   :  { %v2006_v37 = vpop.xlane.xlu0 %2005 }
0x116a   :  { %v2013_v39 = vadd.f32 1e-12, %v2011_v36  ;;  %v2010_v41 = vmul.f32 0.03125, %v2006_v37 }
0x116c   :  { %4519 = vrsqrt.f32 %v2013_v39  ;;  %v2012_v43 = vadd.f32 1e-12, %v2010_v41 }
0x116e   :  { %4521 = vrsqrt.f32 %v2012_v43 }
0x1179   :  { %v4520_v15 = vpop.eup %4519 }
0x117a   :  { %v2017_v46 = vmul.f32 %v4520_v15, %v2001_v44 }
0x117b   :  { %v4522_v56 = vpop.eup %4521 }
0x117c   :  { %v2016_v57 = vmul.f32 %v4522_v56, %v2000_v18  ;;  %v2023_v58 = vmul.f32 %v3996_v45, %v2017_v46 }
0x117e   :  { %v2022_v48 = vmul.f32 %v3996_v45, %v2016_v57  ;;  %v2029_v50 = vadd.f32 %v3997_v47, %v2023_v58 }
0x1180   :  { %v2028_v49 = vadd.f32 %v3997_v47, %v2022_v48 }
0x1182   :  { %4321 = vmatprep.mubr.msk.f32.mxu1 %vm153_vm3, %v2028_v49 }
0x1183   :  { %4322 = vmatmul.mubr.msk.f32.vlgmr.msra.gmra.mxu1 %vm153_vm3, %v2029_v50 }
0x1184   :  { %4326 = vmatprep.mubr.msk.f32.mxu1 %vm4588_vm4, %v4587_v1 }
0x1243   :  { %v4323_v17 = vpop.f32.mrf.mxu1 }
0x1244   :  { %v5114_v52 = vadd.f32 %v4323_v17, %v4002_v51 }
0x1245   :  { %v2112_v38 = vpop.f32.mrf.mxu1 }
0x1246   :  { %v5116_v59 = vadd.f32 %v4002_v51, %v2112_v38  ;;  %2199 = vrot.lane.b32.xlu1 %v5114_v52, %s4589_s16 }
0x1248   :  { %2122 = vrot.lane.b32.xlu0 %v5116_v59, %s4589_s16 }
0x12b8   :  { %v2200_v53 = vpop.permute.xlu1 %2199 }
0x12ba   :  { %v2123_v40 = vpop.permute.xlu0 %2122 }
0x12bb   :  { %4325 = vmatpush3.xpose.msk.msra.mxu1 %vm286_vm5, %v2123_v40 }
0x12bc   :  { %4329 = vmatprep.subr.mxu1 %v4587_v1 }
0x12be   :  { %4327 = vmatmul.mubr.msk.f32.vlgmr.msra.gmra.mxu1 %vm286_vm5, %v5116_v59 }
0x12bf   :  { %4330 = vmatpush3.xpose.msk.msra.mxu1 %vm286_vm5, %v2200_v53  ;;  %4331 = vmatprep.mubr.msk.f32.mxu1 %vm4588_vm4, %v4587_v1 }
0x12c0   :  { %4339 = vmatprep.subr.mxu1 %v4587_v1 }
0x12c2   :  { %4332 = vmatmul.mubr.msk.f32.vlgmr.msra.gmra.mxu1 %vm286_vm5, %v5114_v52 }
0x12c3   :  { %4341 = vmatprep.mubr.msk.f32.mxu1 %vm4588_vm4, %v4587_v1 }
0x137e   :  { %v2194_v54 = vpop.f32.mrf.mxu1 }
0x137f   :  { %v2275_v55 = vmul.f32 0.35355338, %v2194_v54 }
0x1380   :  { %v4328_v60 = vpop.f32.mrf.mxu1 }
0x1381   :  { %v2277_v61 = vadd.f32 %v2275_v55, %v4830_v24 }
0x1382   :  { %v2271_v63 = vpop.f32.mrf.mxu1 }
0x1383   :  { %v2276_v2 = vmul.f32 0.35355338, %v2271_v63  ;;  %v2279_v3 = vsel %vm286_vm5, %v2277_v61, -inf }
0x1384   :  { %2280 = vmax.xlane.f32.xlu1 %v2279_v3  ;;  %v4333_v4 = vpop.f32.mrf.mxu1 }
0x1385   :  { %v2278_v5 = vadd.f32 %v2276_v2, %v4830_v24 }
0x1387   :  { %v2282_v6 = vsel %vm286_vm5, %v2278_v5, -inf }
0x1388   :  { %2283 = vmax.xlane.f32.xlu0 %v2282_v6 }
0x1395   :  { %2377 = vrot.lane.b32.xlu1 %v5114_v52, %s4591_s17 }
0x1399   :  { %2455 = vrot.lane.b32.xlu1 %v5116_v59, %s4592_s18 }
0x139d   :  { %2533 = vrot.lane.b32.xlu1 %v5114_v52, %s4592_s18 }
0x140d   :  { %v2281_v7 = vpop.xlane.xlu1 %2280 }
0x140e   :  { %v2285_v8 = vsub.f32 %v2277_v61, %v2281_v7 }
0x1410   :  { %v2287_v9 = vmul.f32 1.442695, %v2285_v8 }
0x1411   :  { %v2378_v10 = vpop.permute.xlu1 %2377  ;;  %v2284_v11 = vpop.xlane.xlu0 %2283 }
0x1412   :  { %4523 = vpow2.f32 %v2287_v9  ;;  %v2286_v12 = vsub.f32 %v2278_v5, %v2284_v11  ;;  %4340 = vmatpush3.msra.mxu1 %v2378_v10 }
0x1413   :  { %4349 = vmatprep.subr.mxu1 %v4587_v1 }
0x1414   :  { %v2289_v62 = vmul.f32 1.442695, %v2286_v12 }
0x1415   :  { %v2456_v22 = vpop.permute.xlu1 %2455 }
0x1416   :  { %4525 = vpow2.f32 %v2289_v62 }
0x1419   :  { %v2534_v23 = vpop.permute.xlu1 %2533 }
0x141f   :  { %v4524_v13 = vpop.eup %4523 }
0x1420   :  { %v2291_v14 = vsel %vm286_vm5, %v4524_v13, 0.0 }
0x1421   :  { %2292 = vadd.xlane.f32.xlu0 %v2291_v14 }
0x1423   :  { %v4526_v16 = vpop.eup %4525 }
0x1424   :  { %v2294_v20 = vsel %vm286_vm5, %v4526_v16, 0.0 }
0x1425   :  { %2295 = vadd.xlane.f32.xlu1 %v2294_v20 }
0x1436   :  { %2531 = vrot.lane.b32.xlu1 %v5114_v52, %s4593_s19 }
0x1437   :  { %2301 = vrot.lane.b32.xlu0 %v5116_v59, %s4591_s17 }
0x143b   :  { %2453 = vrot.lane.b32.xlu0 %v5116_v59, %s4593_s19 }
0x14aa   :  { %v2293_v25 = vpop.xlane.xlu0 %2292 }
0x14ab   :  { %4527 = vrcp.f32 %v2293_v25 }
0x14ae   :  { %v2296_v26 = vpop.xlane.xlu1 %2295  ;;  %v2302_v27 = vpop.permute.xlu0 %2301 }
0x14af   :  { %4529 = vrcp.f32 %v2296_v26  ;;  %4335 = vmatpush3.msra.mxu0 %v2302_v27 }
0x14b0   :  { %4344 = vmatprep.subr.mxu0 %v4587_v1 }
0x14b2   :  { %v2454_v0 = vpop.permute.xlu0 %2453  ;;  %v2532_v29 = vpop.permute.xlu1 %2531 }
0x14b8   :  { %v4528_v44 = vpop.eup %4527 }
0x14b9   :  { %v2298_v28 = vmul.f32 %v4528_v44, %v4524_v13 }
0x14bb   :  { %4337 = vmatmul.mubr.msk.f32.vlgmr.msra.gmra.mxu0 %vm286_vm5, %v2298_v28 }
0x14bc   :  { %v4530_v18 = vpop.eup %4529  ;;  %4345 = vmatpush3.xpose.msk.msra.mxu0 %vm286_vm5, %v2456_v22  ;;  %4346 = vmatprep.mubr.msk.f32.mxu0 %vm4588_vm4, %v4587_v1 }
0x14bd   :  { %v2300_v42 = vmul.f32 %v4530_v18, %v4526_v16  ;;  %4354 = vmatprep.subr.mxu0 %v4587_v1 }
0x14bf   :  { %4342 = vmatmul.mubr.msk.f32.vlgmr.msra.gmra.mxu1 %vm286_vm5, %v2300_v42  ;;  %4347 = vmatmul.mubr.msk.f32.vlgmr.msra.gmra.mxu0 %vm286_vm5, %v2454_v0 }
0x14c0   :  { %4350 = vmatpush3.xpose.msk.msra.mxu1 %vm286_vm5, %v2534_v23  ;;  %4351 = vmatprep.mubr.msk.f32.mxu1 %vm4588_vm4, %v4587_v1 }
0x14c1   :  { %4359 = vmatprep.subr.mxu1 %v4587_v1  ;;  %4356 = vmatprep.mubr.msk.f32.mxu0 %vm4588_vm4, %v4587_v1 }
0x14c3   :  { %4352 = vmatmul.mubr.msk.f32.vlgmr.msra.gmra.mxu1 %vm286_vm5, %v2532_v29 }
0x14c4   :  { %4361 = vmatprep.mubr.msk.f32.mxu1 %vm4588_vm4, %v4587_v1 }
0x157b   :  { %v5170_v30 = vpop.f32.mrf.mxu0 }
0x157d   :  { %v4338_v35 = vpop.f32.mrf.mxu0 }
0x157f   :  { %v5172_v36 = vpop.f32.mrf.mxu1  ;;  %v2527_v37 = vpop.f32.mrf.mxu0 }
0x1580   :  { %v2609_v39 = vmul.f32 0.35355338, %v2527_v37 }
0x1581   :  { %v4343_v41 = vpop.f32.mrf.mxu1  ;;  %v4348_v43 = vpop.f32.mrf.mxu0 }
0x1582   :  { %v2611_v15 = vadd.f32 %v2609_v39, %v4830_v24 }
0x1583   :  { %v2605_v45 = vpop.f32.mrf.mxu1 }
0x1584   :  { %v2610_v46 = vmul.f32 0.35355338, %v2605_v45  ;;  %v2613_v56 = vsel %vm286_vm5, %v2611_v15, -inf }
0x1585   :  { %2614 = vmax.xlane.f32.xlu0 %v2613_v56  ;;  %v4353_v57 = vpop.f32.mrf.mxu1 }
0x1586   :  { %v2612_v58 = vadd.f32 %v2610_v46, %v4830_v24 }
0x1588   :  { %v2616_v47 = vsel %vm286_vm5, %v2612_v58, -inf }
0x1589   :  { %2617 = vmax.xlane.f32.xlu1 %v2616_v47 }
0x159a   :  { %2711 = vrot.lane.b32.xlu1 %v5114_v52, %s4594_s20 }
0x159b   :  { %2635 = vrot.lane.b32.xlu0 %v5116_v59, %s4594_s20 }
0x159e   :  { %2789 = vrot.lane.b32.xlu1 %v5116_v59, %s4595_s21 }
0x15a2   :  { %2867 = vrot.lane.b32.xlu1 %v5114_v52, %s4595_s21 }
0x15a6   :  { %2865 = vrot.lane.b32.xlu1 %v5114_v52, %s4596_s22 }
0x160e   :  { %v2615_v48 = vpop.xlane.xlu0 %2614 }
0x160f   :  { %v2619_v49 = vsub.f32 %v2611_v15, %v2615_v48 }
0x1611   :  { %v2621_v50 = vmul.f32 1.442695, %v2619_v49 }
0x1612   :  { %v2636_v51 = vpop.permute.xlu0 %2635  ;;  %v2618_v17 = vpop.xlane.xlu1 %2617 }
0x1613   :  { %4531 = vpow2.f32 %v2621_v50  ;;  %v2620_v38 = vsub.f32 %v2612_v58, %v2618_v17  ;;  %4355 = vmatpush3.msra.mxu0 %v2636_v51 }
0x1614   :  { %4364 = vmatprep.subr.mxu0 %v4587_v1 }
0x1615   :  { %v2623_v40 = vmul.f32 1.442695, %v2620_v38 }
0x1616   :  { %v2712_v53 = vpop.permute.xlu1 %2711 }
0x1617   :  { %4533 = vpow2.f32 %v2623_v40  ;;  %4360 = vmatpush3.msra.mxu1 %v2712_v53 }
0x1618   :  { %4369 = vmatprep.subr.mxu1 %v4587_v1 }
0x161a   :  { %v2790_v3 = vpop.permute.xlu1 %2789 }
0x161e   :  { %v2868_v7 = vpop.permute.xlu1 %2867 }
0x1620   :  { %v4532_v54 = vpop.eup %4531 }
0x1621   :  { %v2625_v55 = vsel %vm286_vm5, %v4532_v54, 0.0 }
0x1622   :  { %2626 = vadd.xlane.f32.xlu0 %v2625_v55  ;;  %v2866_v10 = vpop.permute.xlu1 %2865 }
0x1624   :  { %v4534_v60 = vpop.eup %4533 }
0x1625   :  { %v2628_v61 = vsel %vm286_vm5, %v4534_v60, 0.0 }
0x1626   :  { %2629 = vadd.xlane.f32.xlu0 %v2628_v61 }
0x163c   :  { %2787 = vrot.lane.b32.xlu0 %v5116_v59, %s4596_s22 }
0x16ab   :  { %v2627_v63 = vpop.xlane.xlu0 %2626 }
0x16ac   :  { %4535 = vrcp.f32 %v2627_v63 }
0x16af   :  { %v2630_v2 = vpop.xlane.xlu0 %2629 }
0x16b0   :  { %4537 = vrcp.f32 %v2630_v2 }
0x16b3   :  { %v2788_v9 = vpop.permute.xlu0 %2787 }
0x16b9   :  { %v4536_v4 = vpop.eup %4535 }
0x16ba   :  { %v2632_v5 = vmul.f32 %v4536_v4, %v4532_v54 }
0x16bc   :  { %4357 = vmatmul.mubr.msk.f32.vlgmr.msra.gmra.mxu0 %vm286_vm5, %v2632_v5 }
0x16bd   :  { %v4538_v6 = vpop.eup %4537  ;;  %4365 = vmatpush3.xpose.msk.msra.mxu0 %vm286_vm5, %v2790_v3  ;;  %4366 = vmatprep.mubr.msk.f32.mxu0 %vm4588_vm4, %v4587_v1 }
0x16be   :  { %v2634_v8 = vmul.f32 %v4538_v6, %v4534_v60  ;;  %4374 = vmatprep.subr.mxu0 %v4587_v1 }
0x16c0   :  { %4362 = vmatmul.mubr.msk.f32.vlgmr.msra.gmra.mxu1 %vm286_vm5, %v2634_v8  ;;  %4367 = vmatmul.mubr.msk.f32.vlgmr.msra.gmra.mxu0 %vm286_vm5, %v2788_v9 }
0x16c1   :  { %4370 = vmatpush3.xpose.msk.msra.mxu1 %vm286_vm5, %v2868_v7  ;;  %4371 = vmatprep.mubr.msk.f32.mxu1 %vm4588_vm4, %v4587_v1 }
0x16c2   :  { %4379 = vmatprep.subr.mxu1 %v4587_v1  ;;  %4376 = vmatprep.mubr.msk.f32.mxu0 %vm4588_vm4, %v4587_v1 }
0x16c4   :  { %4372 = vmatmul.mubr.msk.f32.vlgmr.msra.gmra.mxu1 %vm286_vm5, %v2866_v10 }
0x16c5   :  { %4381 = vmatprep.mubr.msk.f32.mxu1 %vm4588_vm4, %v4587_v1 }
0x177c   :  { %v5210_v11 = vpop.f32.mrf.mxu0 }
0x177e   :  { %v4358_v12 = vpop.f32.mrf.mxu0 }
0x1780   :  { %v5212_v62 = vpop.f32.mrf.mxu1  ;;  %v2861_v13 = vpop.f32.mrf.mxu0 }
0x1781   :  { %v2943_v14 = vmul.f32 0.35355338, %v2861_v13 }
0x1782   :  { %v4363_v16 = vpop.f32.mrf.mxu1  ;;  %v4368_v20 = vpop.f32.mrf.mxu0 }
0x1783   :  { %v2945_v22 = vadd.f32 %v2943_v14, %v4830_v24 }
0x1784   :  { %v2939_v23 = vpop.f32.mrf.mxu1 }
0x1785   :  { %v2944_v25 = vmul.f32 0.35355338, %v2939_v23  ;;  %v2947_v26 = vsel %vm286_vm5, %v2945_v22, -inf }
0x1786   :  { %2948 = vmax.xlane.f32.xlu0 %v2947_v26  ;;  %v4373_v27 = vpop.f32.mrf.mxu1 }
0x1787   :  { %v2946_v44 = vadd.f32 %v2944_v25, %v4830_v24 }
0x1789   :  { %v2950_v28 = vsel %vm286_vm5, %v2946_v44, -inf }
0x178a   :  { %2951 = vmax.xlane.f32.xlu1 %v2950_v28 }
0x179b   :  { %3045 = vrot.lane.b32.xlu1 %v5114_v52, %s4597_s23 }
0x179c   :  { %2969 = vrot.lane.b32.xlu0 %v5116_v59, %s4597_s23 }
0x179f   :  { %3123 = vrot.lane.b32.xlu1 %v5116_v59, %s4598_s24 }
0x17a3   :  { %3201 = vrot.lane.b32.xlu1 %v5114_v52, %s4598_s24 }
0x17a7   :  { %3199 = vrot.lane.b32.xlu1 %v5114_v52, %s4599_s25 }
0x180f   :  { %v2949_v18 = vpop.xlane.xlu0 %2948 }
0x1810   :  { %v2953_v42 = vsub.f32 %v2945_v22, %v2949_v18 }
0x1812   :  { %v2955_v0 = vmul.f32 1.442695, %v2953_v42 }
0x1813   :  { %v2970_v29 = vpop.permute.xlu0 %2969  ;;  %v2952_v35 = vpop.xlane.xlu1 %2951 }
0x1814   :  { %4539 = vpow2.f32 %v2955_v0  ;;  %v2954_v37 = vsub.f32 %v2946_v44, %v2952_v35  ;;  %4375 = vmatpush3.msra.mxu0 %v2970_v29 }
0x1815   :  { %4384 = vmatprep.subr.mxu0 %v4587_v1 }
0x1816   :  { %v2957_v39 = vmul.f32 1.442695, %v2954_v37 }
0x1817   :  { %v3046_v41 = vpop.permute.xlu1 %3045 }
0x1818   :  { %4541 = vpow2.f32 %v2957_v39  ;;  %4380 = vmatpush3.msra.mxu1 %v3046_v41 }
0x1819   :  { %4389 = vmatprep.subr.mxu1 %v4587_v1 }
0x181b   :  { %v3124_v58 = vpop.permute.xlu1 %3123 }
0x181f   :  { %v3202_v50 = vpop.permute.xlu1 %3201 }
0x1821   :  { %v4540_v43 = vpop.eup %4539 }
0x1822   :  { %v2959_v15 = vsel %vm286_vm5, %v4540_v43, 0.0 }
0x1823   :  { %2960 = vadd.xlane.f32.xlu0 %v2959_v15  ;;  %v3200_v38 = vpop.permute.xlu1 %3199 }
0x1825   :  { %v4542_v45 = vpop.eup %4541 }
0x1826   :  { %v2962_v46 = vsel %vm286_vm5, %v4542_v45, 0.0 }
0x1827   :  { %2963 = vadd.xlane.f32.xlu0 %v2962_v46 }
0x183d   :  { %3121 = vrot.lane.b32.xlu0 %v5116_v59, %s4599_s25 }
0x18ac   :  { %v2961_v56 = vpop.xlane.xlu0 %2960 }
0x18ad   :  { %4543 = vrcp.f32 %v2961_v56 }
0x18b0   :  { %v2964_v57 = vpop.xlane.xlu0 %2963 }
0x18b1   :  { %4545 = vrcp.f32 %v2964_v57 }
0x18b4   :  { %v3122_v17 = vpop.permute.xlu0 %3121 }
0x18ba   :  { %v4544_v47 = vpop.eup %4543 }
0x18bb   :  { %v2966_v48 = vmul.f32 %v4544_v47, %v4540_v43 }
0x18bd   :  { %4377 = vmatmul.mubr.msk.f32.vlgmr.msra.gmra.mxu0 %vm286_vm5, %v2966_v48 }
0x18be   :  { %v4546_v49 = vpop.eup %4545  ;;  %4385 = vmatpush3.xpose.msk.msra.mxu0 %vm286_vm5, %v3124_v58  ;;  %4386 = vmatprep.mubr.msk.f32.mxu0 %vm4588_vm4, %v4587_v1 }
0x18bf   :  { %v2968_v51 = vmul.f32 %v4546_v49, %v4542_v45  ;;  %4394 = vmatprep.subr.mxu0 %v4587_v1 }
0x18c1   :  { %4382 = vmatmul.mubr.msk.f32.vlgmr.msra.gmra.mxu1 %vm286_vm5, %v2968_v51  ;;  %4387 = vmatmul.mubr.msk.f32.vlgmr.msra.gmra.mxu0 %vm286_vm5, %v3122_v17 }
0x18c2   :  { %4390 = vmatpush3.xpose.msk.msra.mxu1 %vm286_vm5, %v3202_v50  ;;  %4391 = vmatprep.mubr.msk.f32.mxu1 %vm4588_vm4, %v4587_v1 }
0x18c3   :  { %4399 = vmatprep.subr.mxu1 %v4587_v1  ;;  %4396 = vmatprep.mubr.msk.f32.mxu0 %vm4588_vm4, %v4587_v1 }
0x18c5   :  { %4392 = vmatmul.mubr.msk.f32.vlgmr.msra.gmra.mxu1 %vm286_vm5, %v3200_v38 }
0x18c6   :  { %4401 = vmatprep.mubr.msk.f32.mxu1 %vm4588_vm4, %v4587_v1 }
0x197d   :  { %v3041_v40 = vpop.f32.mrf.mxu0 }
0x197f   :  { %v4378_v53 = vpop.f32.mrf.mxu0 }
0x1981   :  { %v3117_v54 = vpop.f32.mrf.mxu1  ;;  %v3195_v55 = vpop.f32.mrf.mxu0 }
0x1982   :  { %v3277_v60 = vmul.f32 0.35355338, %v3195_v55 }
0x1983   :  { %v4383_v61 = vpop.f32.mrf.mxu1  ;;  %v4388_v63 = vpop.f32.mrf.mxu0 }
0x1984   :  { %v3279_v2 = vadd.f32 %v3277_v60, %v4830_v24 }
0x1985   :  { %v3273_v3 = vpop.f32.mrf.mxu1 }
0x1986   :  { %v3278_v4 = vmul.f32 0.35355338, %v3273_v3  ;;  %v3281_v5 = vsel %vm286_vm5, %v3279_v2, -inf  ;;  %v4037_v3 = vld [vmem:[%s5394_s3 + $0x78] sm:$0xff] }
0x1987   :  { %3282 = vmax.xlane.f32.xlu0 %v3281_v5  ;;  %v4393_v6 = vpop.f32.mrf.mxu1  ;;  %v4035_v5 = vld [vmem:[%s5394_s3 + $0x68] sm:$0xff] }
0x1988   :  { %v3280_v7 = vadd.f32 %v3278_v4, %v4830_v24  ;;  %v4036_v4 = vld [vmem:[%s5394_s3 + $0x70] sm:$0xff]  ;;  %v4034_v6 = vld [vmem:[%s5394_s3 + $0x60] sm:$0xff] }
0x198a   :  { %v3284_v8 = vsel %vm286_vm5, %v3280_v7, -inf }
0x198b   :  { %3285 = vmax.xlane.f32.xlu1 %v3284_v8 }
0x199c   :  { %3379 = vrot.lane.b32.xlu1 %v5114_v52, %s4600_s0 }
0x19a0   :  { %3500 = vrot.lane.b32.xlu1 %v5075_v31, %s4601_s26 }
0x19a4   :  { %3498 = vrot.lane.b32.xlu1 %v5080_v32, %s4601_s26 }
0x19a8   :  { %3496 = vrot.lane.b32.xlu1 %v5087_v33, %s4601_s26 }
0x19ac   :  { %3465 = vrot.lane.b32.xlu1 %v3041_v40, %s4602_s27 }
0x1a10   :  { %v3283_v9 = vpop.xlane.xlu0 %3282 }
0x1a11   :  { %v3287_v10 = vsub.f32 %v3279_v2, %v3283_v9 }
0x1a13   :  { %v3289_v24 = vmul.f32 1.442695, %v3287_v10 }
0x1a14   :  { %v3286_v12 = vpop.xlane.xlu1 %3285 }
0x1a15   :  { %4547 = vpow2.f32 %v3289_v24  ;;  %v3288_v13 = vsub.f32 %v3280_v7, %v3286_v12 }
0x1a17   :  { %v3291_v14 = vmul.f32 1.442695, %v3288_v13 }
0x1a18   :  { %v3380_v16 = vpop.permute.xlu1 %3379 }
0x1a19   :  { %4549 = vpow2.f32 %v3291_v14  ;;  %4400 = vmatpush3.msra.mxu1 %v3380_v16  ;;  %v4032_v14 = vld [vmem:[%s5395_s4 + $0x16] ss:$0 sm:$0xff] }
0x1a1a   :  { %4415 = vmatprep.subr.mxu1 %v4037_v3 }
0x1a1c   :  { %v3501_v23 = vpop.permute.xlu1 %3500 }
0x1a20   :  { %v3499_v26 = vpop.permute.xlu1 %3498 }
0x1a22   :  { %v4548_v52 = vpop.eup %4547 }
0x1a23   :  { %v3293_v31 = vsel %vm286_vm5, %v4548_v52, 0.0 }
0x1a24   :  { %3294 = vadd.xlane.f32.xlu0 %v3293_v31  ;;  %v3497_v44 = vpop.permute.xlu1 %3496 }
0x1a26   :  { %v4550_v32 = vpop.eup %4549 }
0x1a27   :  { %v3296_v20 = vsel %vm286_vm5, %v4550_v32, 0.0 }
0x1a28   :  { %3297 = vadd.xlane.f32.xlu0 %v3296_v20  ;;  %v3466_v39 = vpop.permute.xlu1 %3465 }
0x1a3e   :  { %3303 = vrot.lane.b32.xlu0 %v5116_v59, %s4600_s0 }
0x1a42   :  { %3457 = vrot.lane.b32.xlu0 %v5210_v11, %s4603_s28 }
0x1a46   :  { %3459 = vrot.lane.b32.xlu0 %v5212_v62, %s4603_s28 }
0x1a4a   :  { %3467 = vrot.lane.b32.xlu0 %v3117_v54, %s4602_s27 }
0x1a4e   :  { %3494 = vrot.lane.b32.xlu0 %v5094_v34, %s4601_s26 }
0x1aad   :  { %v3295_v33 = vpop.xlane.xlu0 %3294 }
0x1aae   :  { %4551 = vrcp.f32 %v3295_v33 }
0x1ab1   :  { %v3298_v22 = vpop.xlane.xlu0 %3297 }
0x1ab2   :  { %4553 = vrcp.f32 %v3298_v22 }
0x1ab5   :  { %v3304_v25 = vpop.permute.xlu0 %3303 }
0x1ab6   :  { %4395 = vmatpush3.msra.mxu0 %v3304_v25  ;;  %v4045_v25 = vld [vmem:[%s5394_s3 + $0xb8] sm:$0xff] }
0x1ab7   :  { %4404 = vmatprep.subr.mxu0 %v3501_v23 }
0x1ab9   :  { %v3458_v34 = vpop.permute.xlu0 %3457 }
0x1aba   :  { %v3479_v41 = vsel %vm286_vm5, %v5170_v30, %v3458_v34  ;;  %v4029_v30 = vld [vmem:[%s5395_s4 + $0x15] ss:$0 sm:$0xff]  ;;  %v4038_v34 = vld [vmem:[%s5394_s3 + $0x80] sm:$0xff] }
0x1abb   :  { %v4552_v59 = vpop.eup %4551  ;;  %v3481_v43 = vsel %vm1644_vm7, %v3479_v41, %v3466_v39 }
0x1abc   :  { %v3300_v27 = vmul.f32 %v4552_v59, %v4548_v52  ;;  %v4033_v52 = vld [vmem:[%s5395_s4 + $0x17] ss:$0 sm:$0xff] }
0x1abd   :  { %v3460_v28 = vpop.permute.xlu0 %3459  ;;  %v4044_v59 = vld [vmem:[%s5394_s3 + $0xb0] sm:$0xff] }
0x1abe   :  { %4397 = vmatmul.mubr.msk.f32.vlgmr.msra.gmra.mxu0 %vm286_vm5, %v3300_v27  ;;  %v3480_v46 = vsel %vm286_vm5, %v5172_v36, %v3460_v28  ;;  %v4042_v27 = vld [vmem:[%s5394_s3 + $0xa0] sm:$0xff]  ;;  %v4046_v28 = vld [vmem:[%s5395_s4 + $0x18] ss:$0 sm:$0xff] }
0x1abf   :  { %v4554_v11 = vpop.eup %4553  ;;  %4405 = vmatpush3.msra.mxu0 %v3501_v23 }
0x1ac0   :  { %v3302_v62 = vmul.f32 %v4554_v11, %v4550_v32  ;;  %4406 = vmatprep.subr.mxu0 %v3499_v26  ;;  %v4041_v11 = vld [vmem:[%s5394_s3 + $0x98] sm:$0xff] }
0x1ac1   :  { %4407 = vmatpush3.msra.mxu0 %v3499_v26  ;;  %v3468_v18 = vpop.permute.xlu0 %3467  ;;  %v4043_v26 = vld [vmem:[%s5394_s3 + $0xa8] sm:$0xff] }
0x1ac2   :  { %4402 = vmatmul.mubr.msk.f32.vlgmr.msra.gmra.mxu1 %vm286_vm5, %v3302_v62  ;;  %4408 = vmatprep.subr.mxu0 %v3497_v44  ;;  %v3482_v56 = vsel %vm1644_vm7, %v3480_v46, %v3468_v18  ;;  %v4040_v62 = vld [vmem:[%s5394_s3 + $0x90] sm:$0xff] }
0x1ac3   :  { %4409 = vmatpush3.msra.mxu0 %v3497_v44  ;;  %4416 = vmatpush3.msra.mxu1 %v4037_v3  ;;  %v4039_v44 = vld [vmem:[%s5394_s3 + $0x88] sm:$0xff] }
0x1ac4   :  { %4417 = vmatprep.subr.mxu1 %v4036_v4 }
0x1ac5   :  { %v3495_v42 = vpop.permute.xlu0 %3494  ;;  %4418 = vmatpush3.msra.mxu1 %v4036_v4 }
0x1ac6   :  { %4410 = vmatprep.subr.mxu0 %v3495_v42  ;;  %4419 = vmatprep.subr.mxu1 %v4035_v5 }
0x1ac7   :  { %4411 = vmatpush3.msra.mxu0 %v3495_v42  ;;  %4420 = vmatpush3.msra.mxu1 %v4035_v5 }
0x1ac8   :  { %4421 = vmatprep.subr.mxu1 %v4034_v6  ;;  %4426 = vmatprep.subr.mxu0 %v4045_v25 }
0x1ac9   :  { %4422 = vmatpush3.msra.mxu1 %v4034_v6  ;;  %v4052_v6 = vld [vmem:[%s5395_s4 + $0x7] ss:$0 sm:$0xff] }
0x1aca   :  { %4445 = vmatprep.subr.mxu1 %v4587_v1 }
0x1b7e   :  { %v3375_v0 = vpop.f32.mrf.mxu0 }
0x1b7f   :  { %3473 = vrot.lane.b32.xlu1 %v3375_v0, %s4604_s29 }
0x1b80   :  { %v4398_v29 = vpop.f32.mrf.mxu0 }
0x1b82   :  { %v3451_v35 = vpop.f32.mrf.mxu1 }
0x1b83   :  { %3475 = vrot.lane.b32.xlu1 %v3451_v35, %s4604_s29 }
0x1b84   :  { %v4403_v37 = vpop.f32.mrf.mxu1 }
0x1bf1   :  { %v3474_v15 = vpop.permute.xlu1 %3473 }
0x1bf2   :  { %v3483_v45 = vsel %vm1647_vm8, %v3481_v43, %v3474_v15 }
0x1bf3   :  { %4412 = vmatprep.mubr.msk.f32.mxu0 %vm153_vm3, %v3483_v45 }
0x1bf5   :  { %v3476_v57 = vpop.permute.xlu1 %3475 }
0x1bf6   :  { %v3484_v58 = vsel %vm1647_vm8, %v3482_v56, %v3476_v57 }
0x1bf7   :  { %4413 = vmatmul.mubr.msk.f32.vlgmr.msra.gmra.mxu0 %vm153_vm3, %v3484_v58  ;;  %v4049_v58 = vld [vmem:[%s5395_s4 + $0x19] ss:$0 sm:$0xff] }
0x1bf8   :  { %4427 = vmatpush3.msra.mxu0 %v4045_v25 }
0x1bf9   :  { %4428 = vmatprep.subr.mxu0 %v4044_v59 }
0x1bfa   :  { %4429 = vmatpush3.msra.mxu0 %v4044_v59 }
0x1bfb   :  { %4430 = vmatprep.subr.mxu0 %v4043_v26 }
0x1bfc   :  { %4431 = vmatpush3.msra.mxu0 %v4043_v26 }
0x1bfd   :  { %4432 = vmatprep.subr.mxu0 %v4042_v27 }
0x1bfe   :  { %4433 = vmatpush3.msra.mxu0 %v4042_v27 }
0x1bff   :  { %4434 = vmatprep.subr.mxu0 %v4041_v11 }
0x1c00   :  { %4435 = vmatpush3.msra.mxu0 %v4041_v11 }
0x1c01   :  { %4436 = vmatprep.subr.mxu0 %v4040_v62 }
0x1c02   :  { %4437 = vmatpush3.msra.mxu0 %v4040_v62 }
0x1c03   :  { %4438 = vmatprep.subr.mxu0 %v4039_v44 }
0x1c04   :  { %4439 = vmatpush3.msra.mxu0 %v4039_v44 }
0x1c05   :  { %4440 = vmatprep.subr.mxu0 %v4038_v34 }
0x1c06   :  { %4441 = vmatpush3.msra.mxu0 %v4038_v34 }
0x1cb7   :  { %v4414_v47 = vpop.f32.mrf.mxu0 }
0x1cb8   :  { %v3584_v48 = vadd.f32 %v4414_v47, %v4029_v30 }
0x1cb9   :  { %v3578_v49 = vpop.f32.mrf.mxu0 }
0x1cba   :  { %v5292_v50 = vadd.f32 %v3584_v48, %v5059_v19  ;;  %v3579_v51 = vadd.f32 %v4029_v30, %v3578_v49 }
0x1cbc   :  { %v5295_v36 = vadd.f32 %v3579_v51, %v5062_v21  ;;  %v3594_v17 = vsel %vm153_vm3, %v5292_v50, 0.0 }
0x1cbd   :  { %3595 = vadd.xlane.f32.xlu1 %v3594_v17 }
0x1cbe   :  { %v3591_v38 = vsel %vm153_vm3, %v5295_v36, 0.0 }
0x1cbf   :  { %3592 = vadd.xlane.f32.xlu0 %v3591_v38 }
0x1d46   :  { %v3596_v40 = vpop.xlane.xlu1 %3595 }
0x1d47   :  { %v3598_v53 = vmul.f32 0.03125, %v3596_v40 }
0x1d48   :  { %v3593_v54 = vpop.xlane.xlu0 %3592 }
0x1d49   :  { %v3597_v55 = vmul.f32 0.03125, %v3593_v54  ;;  %v3600_v60 = vsub.f32 %v5292_v50, %v3598_v53 }
0x1d4b   :  { %v3599_v19 = vsub.f32 %v5295_v36, %v3597_v55  ;;  %v3602_v63 = vmul.f32 %v3600_v60, %v3600_v60 }
0x1d4d   :  { %v3601_v61 = vmul.f32 %v3599_v19, %v3599_v19  ;;  %v3606_v2 = vsel %vm153_vm3, %v3602_v63, 0.0  ;;  %v3856_v63 = vld [vmem:[%s5392_s1 + $0xc0] sm:$0xff] }
0x1d4f   :  { %v3603_v21 = vsel %vm153_vm3, %v3601_v61, 0.0 }
0x1d50   :  { %3604 = vadd.xlane.f32.xlu0 %v3603_v21  ;;  %v3859_v21 = vld [vmem:[%s5392_s1 + $0xd8] sm:$0xff] }
0x1d54   :  { %3607 = vadd.xlane.f32.xlu0 %v3606_v2 }
0x1dd9   :  { %v3605_v7 = vpop.xlane.xlu0 %3604 }
0x1dda   :  { %v3609_v8 = vmul.f32 0.03125, %v3605_v7 }
0x1ddc   :  { %v3611_v9 = vadd.f32 1e-12, %v3609_v8  ;;  %v4053_v8 = vld [vmem:[%s5395_s4 + $0x8] ss:$0 sm:$0xff] }
0x1ddd   :  { %v3608_v10 = vpop.xlane.xlu0 %3607 }
0x1dde   :  { %4555 = vrsqrt.f32 %v3611_v9  ;;  %v3610_v24 = vmul.f32 0.03125, %v3608_v10 }
0x1de0   :  { %v3612_v12 = vadd.f32 1e-12, %v3610_v24 }
0x1de2   :  { %4557 = vrsqrt.f32 %v3612_v12 }
0x1deb   :  { %v4556_v13 = vpop.eup %4555 }
0x1dec   :  { %v3615_v16 = vmul.f32 %v4556_v13, %v3599_v19 }
0x1dee   :  { %v3621_v31 = vmul.f32 %v4032_v14, %v3615_v16 }
0x1def   :  { %v4558_v32 = vpop.eup %4557 }
0x1df0   :  { %v3616_v20 = vmul.f32 %v4558_v32, %v3600_v60  ;;  %v3627_v33 = vadd.f32 %v4033_v52, %v3621_v31 }
0x1df2   :  { %v3622_v22 = vmul.f32 %v4032_v14, %v3616_v20  ;;  %4423 = vmatprep.mubr.msk.f32.mxu1 %vm153_vm3, %v3627_v33 }
0x1df4   :  { %v3628_v23 = vadd.f32 %v4033_v52, %v3622_v22 }
0x1df6   :  { %4424 = vmatmul.mubr.msk.f32.vlgmr.msra.gmra.mxu1 %vm153_vm3, %v3628_v23 }
0x1df7   :  { %4453 = vmatprep.mubr.msk.f32.mxu1 %vm4588_vm4, %v4587_v1  ;;  %4446 = vmatpush3.msra.mxu1 %v3859_v21 }
0x1df8   :  { %4447 = vmatprep.subr.mxu1 %v4587_v1 }
0x1eb6   :  { %v4425_v18 = vpop.f32.mrf.mxu1 }
0x1eb7   :  { %v3725_v42 = vadd.f32 %v4425_v18, %v4046_v28 }
0x1eb8   :  { %v3719_v0 = vpop.f32.mrf.mxu1 }
0x1eb9   :  { %v3731_v29 = vmul.f32 0.70710677, %v3725_v42  ;;  %v3720_v35 = vadd.f32 %v4046_v28, %v3719_v0  ;;  %v3729_v46 = vmul.f32 0.5, %v3725_v42 }
0x1ebb   :  { %4559 = verf.f32 %v3731_v29  ;;  %v3730_v37 = vmul.f32 0.70710677, %v3720_v35  ;;  %v3728_v15 = vmul.f32 0.5, %v3720_v35 }
0x1ebd   :  { %4561 = verf.f32 %v3730_v37 }
0x1ec8   :  { %v4560_v39 = vpop.eup %4559 }
0x1ec9   :  { %v3735_v43 = vadd.f32 1.0, %v4560_v39 }
0x1eca   :  { %v4562_v41 = vpop.eup %4561 }
0x1ecb   :  { %v3734_v45 = vadd.f32 1.0, %v4562_v41  ;;  %v3737_v57 = vmul.f32 %v3735_v43, %v3729_v46 }
0x1ecd   :  { %v3736_v56 = vmul.f32 %v3734_v45, %v3728_v15 }
0x1ecf   :  { %4442 = vmatprep.mubr.msk.f32.mxu0 %vm52_vm0, %v3736_v56 }
0x1ed0   :  { %4443 = vmatmul.mubr.msk.f32.vlgmr.msra.gmra.mxu0 %vm52_vm0, %v3737_v57 }
0x1f90   :  { %v4444_v30 = vpop.f32.mrf.mxu0 }
0x1f91   :  { %v3821_v47 = vadd.f32 %v4444_v30, %v4049_v58 }
0x1f92   :  { %v3815_v48 = vpop.f32.mrf.mxu0 }
0x1f93   :  { %v3825_v49 = vadd.f32 %v3821_v47, %v5292_v50  ;;  %v3816_v51 = vadd.f32 %v4049_v58, %v3815_v48  ;;  %v3858_v50 = vld [vmem:[%s5392_s1 + $0xd0] sm:$0xff] }
0x1f94   :  { %4448 = vmatpush3.msra.mxu1 %v3858_v50 }
0x1f95   :  { %v3827_v17 = vrot.slane %v3825_v49, 7  ;;  %v3824_v38 = vadd.f32 %v3816_v51, %v5295_v36  ;;  %v3857_v36 = vld [vmem:[%s5392_s1 + $0xc8] sm:$0xff]  ;;  %4449 = vmatprep.subr.mxu1 %v4587_v1 }
0x1f96   :  { %4450 = vmatpush3.msra.mxu1 %v3857_v36 }
0x1f97   :  { %v3829_v40 = vsel %vm141_vm1, %v3824_v38, %v3827_v17  ;;  %4451 = vmatprep.subr.mxu1 %v4587_v1  ;;  %v4054_v1 = vld [vmem:[%s5395_s4 + $0x9] ss:$0 sm:$0xff] }
0x1f98   :  { %v3833_v53 = vsel %vm3832_vm9, %v3829_v40, 0.0  ;;  %4452 = vmatpush3.msra.mxu1 %v3856_v63 }
0x1f99   :  { %3834 = vadd.xlane.f32.xlu0 %v3833_v53 }
0x2022   :  { %v3835_v54 = vpop.xlane.xlu0 %3834 }
0x2023   :  { %v3836_v55 = vmul.f32 0.03125, %v3835_v54 }
0x2025   :  { %v3837_v60 = vsub.f32 %v3829_v40, %v3836_v55 }
0x2027   :  { %v3838_v19 = vmul.f32 %v3837_v60, %v3837_v60 }
0x2029   :  { %v3839_v61 = vsel %vm3832_vm9, %v3838_v19, 0.0 }
0x202a   :  { %3840 = vadd.xlane.f32.xlu1 %v3839_v61 }
0x20b3   :  { %v3841_v2 = vpop.xlane.xlu1 %3840 }
0x20b4   :  { %v3842_v3 = vmul.f32 0.03125, %v3841_v2 }
0x20b6   :  { %v3843_v4 = vadd.f32 1e-12, %v3842_v3 }
0x20b8   :  { %4563 = vrsqrt.f32 %v3843_v4 }
0x20c5   :  { %v4564_v5 = vpop.eup %4563 }
0x20c6   :  { %v3845_v7 = vmul.f32 %v4564_v5, %v3837_v60 }
0x20c8   :  { %v3850_v9 = vmul.f32 %v4052_v6, %v3845_v7 }
0x20ca   :  { %v3855_v10 = vadd.f32 %v4053_v8, %v3850_v9 }
0x20cc   :  { %4454 = vmatmul.mubr.msk.f32.vlgmr.msra.gmra.mxu1 %vm153_vm3, %v3855_v10 }
0x218c   :  { %v3934_v24 = vpop.f32.mrf.mxu1 }
0x218d   :  { %v3935_v12 = vadd.f32 %v4054_v1, %v3934_v24 }
0x218e   :  { %v4455_v13 = vpop.f32.mrf.mxu1 }
0x218f   :  { %3939 = vst.msk [vmem:[#allocation2] sm:$0x3] %vm3938_vm10, %v3935_v12 }
0x2190   :  { %4576 = shalt.err (!%p4573_p4)
}
0x2191   :  { %3949 = dma.vmem_to_hbm [thread:$0]  %s3947_s13, 32, %s5396_s5, [#allocation3]  }
0x2192   :  { %4585 = dma.done.wait [#allocation3], 32  }
0x2193   :  { %4586 = vsyncadd [#allocation3], 4294967264 }
0x2194   :  { %3953 = vsyncpa [#allocation3], 1 }

</bundles_post_ra>
